<compile_context>
chip_gen: v6e
topology: v6e:2x2x1
jax: 0.10.0
libtpu: 0.0.40
codegen_flags: <defaults>
</compile_context>

<pallas_src>
import functools

import jax
import jax.numpy as jnp
from jax.experimental import pallas as pl
from jax.experimental.pallas import tpu as pltpu


# -----------------------------------------------------------------------------
# Kernel
# -----------------------------------------------------------------------------
def _tds_fc_kernel(x_ref, w1_ref, w2_ref, p_ref, o_ref, *,
                   total_t, tile_t, mask_tail):
    """One (F, tT) tile:  o = LayerNorm_F( W2 @ relu(W1 @ x + b1) + b2 + x )."""
    x = x_ref[...].astype(jnp.float32)                      # (F, tT)

    if mask_tail:
        # Boundary block along T: out-of-range lanes of the input tile are
        # undefined (their output stores are masked by Pallas anyway); zero
        # them so the in-kernel math never sees garbage.
        t0 = pl.program_id(1) * tile_t
        col = jax.lax.broadcasted_iota(jnp.int32, x.shape, dimension=1)
        x = jnp.where((col + t0) < total_t, x, 0.0)

    x_b = x.astype(jnp.bfloat16)

    p = p_ref[...]                                           # (F, 4)
    b1, b2 = p[:, 0:1], p[:, 1:2]
    gamma, beta = p[:, 2:3], p[:, 3:4]

    # fc_block along the feature (sublane) axis; bf16 MXU operands, f32 acc.
    h = jnp.dot(w1_ref[...], x_b, preferred_element_type=jnp.float32) + b1
    h = jnp.maximum(h, 0.0)
    y = jnp.dot(w2_ref[...], h.astype(jnp.bfloat16),
                preferred_element_type=jnp.float32) + b2

    # Residual (f32).
    y = y + x

    # LayerNorm over features (sublanes), fused single-pass statistics.
    inv_f = jnp.float32(1.0 / y.shape[0])
    mean = jnp.sum(y, axis=0, keepdims=True) * inv_f
    ex2 = jnp.sum(y * y, axis=0, keepdims=True) * inv_f
    var = jnp.maximum(ex2 - mean * mean, 0.0)
    y_hat = (y - mean) * jax.lax.rsqrt(var + 1e-5)           # eps = nn.LayerNorm default
    o_ref[...] = (y_hat * gamma + beta).astype(o_ref.dtype)


# -----------------------------------------------------------------------------
# Wrapper
# -----------------------------------------------------------------------------
_VMEM_CAP_BYTES = 48 * 1024 * 1024    # conservative: v7x physical VMEM = 64 MiB / TC


def _resident_block_spec(shape, index_map):
    """BlockSpec for an operand whose block index never changes.

    Single-buffer it when this JAX version supports pipeline_mode (the second
    pipeline buffer is pure waste for constant-index operands).
    Returns (spec, buffer_count).
    """
    if hasattr(pl, "Buffered"):
        try:
            return pl.BlockSpec(shape, index_map,
                                pipeline_mode=pl.Buffered(1)), 1
        except TypeError:
            pass
    return pl.BlockSpec(shape, index_map), 2


def _vmem_need_bytes(F, tT, x_itemsize, weight_buffers):
    act = F * tT
    tiles = 2 * 2 * act * x_itemsize                         # x-in + out, double-buffered
    weights = weight_buffers * (2 * F * F * 2 + F * 4 * 4)   # bf16 W1+W2, f32 param slab
    interm = 4 * act * 4                                     # h / y / temporaries (f32)
    return tiles + weights + interm


def tds_fully_connected_block(x, w1, b1, w2, b2, gamma, beta, *, block_t=1024):
    """TDSFullyConnectedBlock forward on native (N, C, T) layout.

    x: (N, C, T) with C == num_features. Returns the same shape / dtype.
    """
    assert block_t % 128 == 0
    N, F, T = x.shape

    # Probe whether single-buffered resident specs are available (affects VMEM).
    _, weight_buffers = _resident_block_spec((F, F), lambda n, t: (0, 0))

    # --- time (lane) tile selection ------------------------------------------
    tT = T if T <= block_t else block_t
    # Shrink (keeping 128-alignment) if the working set would blow the cap.
    while (tT % 128 == 0 and tT > 128 and
           _vmem_need_bytes(F, tT, x.dtype.itemsize, weight_buffers)
           > _VMEM_CAP_BYTES):
        tT = max(128, (tT // 2 // 128) * 128)
    grid_t = pl.cdiv(T, tT)
    # Keep at least 2 parallel steps so both v7x TensorCores get work.
    if N * grid_t < 2 and tT % 128 == 0 and tT > 128:
        tT = max(128, (tT // 2 // 128) * 128)
        grid_t = pl.cdiv(T, tT)
    mask_tail = (T % tT) != 0

    # --- operands --------------------------------------------------------------
    # Weights stay in PyTorch (out, in) layout (y = W @ x in this data layout);
    # carried resident in bf16.  b1/b2/gamma/beta fold into one (F, 4) slab.
    w1_b = w1.astype(jnp.bfloat16)
    w2_b = w2.astype(jnp.bfloat16)
    params = jnp.stack([b1, b2, gamma, beta], axis=-1).astype(jnp.float32)

    w1_spec, _ = _resident_block_spec((F, F), lambda n, t: (0, 0))
    w2_spec, _ = _resident_block_spec((F, F), lambda n, t: (0, 0))
    p_spec, _ = _resident_block_spec((F, 4), lambda n, t: (0, 0))

    need = _vmem_need_bytes(F, tT, x.dtype.itemsize, weight_buffers)
    vmem_limit = int(min(max(need * 3 // 2 + (2 << 20), 32 << 20),
                         _VMEM_CAP_BYTES))

    grid = (N, grid_t)
    flops = 4 * N * T * F * F                                # two (F,F)x(F,T) matmuls
    bytes_accessed = (2 * N * F * T) * x.dtype.itemsize + 2 * F * F * 2 + F * 4 * 4

    kernel = functools.partial(_tds_fc_kernel, total_t=T, tile_t=tT,
                               mask_tail=mask_tail)

    return pl.pallas_call(
        kernel,
        out_shape=jax.ShapeDtypeStruct((N, F, T), x.dtype),
        grid_spec=pltpu.PrefetchScalarGridSpec(
            num_scalar_prefetch=0,
            grid=grid,
            in_specs=[
                pl.BlockSpec((None, F, tT), lambda n, t: (n, 0, t)),   # x tile
                w1_spec,                                               # W1 (resident)
                w2_spec,                                               # W2 (resident)
                p_spec,                                                # b1|b2|gamma|beta
            ],
            out_specs=pl.BlockSpec((None, F, tT), lambda n, t: (n, 0, t)),
        ),
        compiler_params=pltpu.CompilerParams(
            dimension_semantics=("parallel", "parallel"),
            vmem_limit_bytes=vmem_limit,
        ),
        cost_estimate=pl.CostEstimate(
            flops=flops, transcendentals=N * T, bytes_accessed=bytes_accessed),
    )(x, w1_b, w2_b, params)


# -----------------------------------------------------------------------------
# Pure-JAX reference (mirrors the PyTorch forward; matmul operands in bf16 as
# in the kernel, accumulation and everything else in f32).
# -----------------------------------------------------------------------------
def reference(x, w1, b1, w2, b2, gamma, beta):
    xs = jnp.swapaxes(x, -1, -2).astype(jnp.float32)                  # (N, T, C)
    h = jnp.dot(xs.astype(jnp.bfloat16), w1.T.astype(jnp.bfloat16),
                preferred_element_type=jnp.float32) + b1
    h = jnp.maximum(h, 0.0)
    y = jnp.dot(h.astype(jnp.bfloat16), w2.T.astype(jnp.bfloat16),
                preferred_element_type=jnp.float32) + b2
    y = jnp.swapaxes(y, -1, -2) + x                                   # (N, C, T)
    ys = jnp.swapaxes(y, -1, -2)
    mean = jnp.mean(ys, axis=-1, keepdims=True)
    var = jnp.mean((ys - mean) ** 2, axis=-1, keepdims=True)
    ln = (ys - mean) / jnp.sqrt(var + 1e-5) * gamma + beta
    return jnp.swapaxes(ln, -1, -2).astype(x.dtype)


if __name__ == "__main__":
    key = jax.random.PRNGKey(0)

    # (N, num_features, T, block_t):
    #   1) 128-aligned case, full-T tile
    #   2) T not 128-aligned, single full-extent tile (masked partial stores)
    #   3) T not tile-aligned with T > tile -> exercises the boundary-block
    #      (masked output / in-kernel tail-mask) path.
    cases = [(2, 128, 512, 1024), (2, 64, 300, 1024), (2, 64, 300, 256)]

    for (N, num_features, T, bt) in cases:
        key, kx, k1, k2, k3, k4, k5, k6 = jax.random.split(key, 8)

        x = jax.random.normal(kx, (N, num_features, T), dtype=jnp.float32)

        scale = 1.0 / jnp.sqrt(jnp.float32(num_features))
        w1 = jax.random.uniform(k1, (num_features, num_features), jnp.float32,
                                -scale, scale)
        b1 = jax.random.uniform(k2, (num_features,), jnp.float32, -scale, scale)
        w2 = jax.random.uniform(k3, (num_features, num_features), jnp.float32,
                                -scale, scale)
        b2 = jax.random.uniform(k4, (num_features,), jnp.float32, -scale, scale)
        gamma = 1.0 + 0.1 * jax.random.normal(k5, (num_features,), jnp.float32)
        beta = 0.1 * jax.random.normal(k6, (num_features,), jnp.float32)

        out = tds_fully_connected_block(x, w1, b1, w2, b2, gamma, beta,
                                        block_t=bt)
        out = jax.block_until_ready(out)

        ref = reference(x, w1, b1, w2, b2, gamma, beta)
        assert out.shape == x.shape and out.dtype == x.dtype
        max_err = float(jnp.max(jnp.abs(out - ref)))
        assert jnp.allclose(out, ref, atol=1e-2, rtol=1e-2), max_err

    print("KERNEL_OK")
</pallas_src>

<mosaic_0001>
module attributes {stable_mosaic.version = 11 : i64} {
  func.func @_tds_fc_kernel(%arg0: i32, %arg1: i32, %arg2: memref<1x128x512xf32, #tpu.memory_space<vmem>>, %arg3: memref<128x128xbf16, #tpu.memory_space<vmem>>, %arg4: memref<128x128xbf16, #tpu.memory_space<vmem>>, %arg5: memref<128x4xf32, #tpu.memory_space<vmem>>, %arg6: memref<1x128x512xf32, #tpu.memory_space<vmem>>) attributes {dimension_semantics = [#tpu.dimension_semantics<parallel>, #tpu.dimension_semantics<parallel>], iteration_bounds = array<i64: 2, 1>, scalar_prefetch = 0 : i64, scratch_operands = 0 : i64, tpu.core_type = #tpu.core_type<tc>, window_params = [{transform_indices = @transform_0, window_bounds = array<i64: 1, 128, 512>}, {pipeline_mode = #tpu.pipeline_mode<synchronous>, transform_indices = @transform_1, window_bounds = array<i64: 128, 128>}, {pipeline_mode = #tpu.pipeline_mode<synchronous>, transform_indices = @transform_2, window_bounds = array<i64: 128, 128>}, {pipeline_mode = #tpu.pipeline_mode<synchronous>, transform_indices = @transform_3, window_bounds = array<i64: 128, 4>}, {transform_indices = @transform_4, window_bounds = array<i64: 1, 128, 512>}]} {
    %c0 = arith.constant 0 : index
    %c0_0 = arith.constant 0 : index
    %c0_1 = arith.constant 0 : index
    %0 = vector.load %arg2[%c0, %c0_0, %c0_1] : memref<1x128x512xf32, #tpu.memory_space<vmem>>, vector<1x128x512xf32>
    %1 = vector.shape_cast %0 : vector<1x128x512xf32> to vector<128x512xf32>
    %2 = arith.truncf %1 : vector<128x512xf32> to vector<128x512xbf16>
    %c0_2 = arith.constant 0 : index
    %c0_3 = arith.constant 0 : index
    %3 = vector.load %arg5[%c0_2, %c0_3] : memref<128x4xf32, #tpu.memory_space<vmem>>, vector<128x4xf32>
    %4 = vector.extract_strided_slice %3 {offsets = [0, 0], sizes = [128, 1], strides = [1, 1]} : vector<128x4xf32> to vector<128x1xf32>
    %5 = vector.extract_strided_slice %3 {offsets = [0, 1], sizes = [128, 1], strides = [1, 1]} : vector<128x4xf32> to vector<128x1xf32>
    %6 = vector.extract_strided_slice %3 {offsets = [0, 2], sizes = [128, 1], strides = [1, 1]} : vector<128x4xf32> to vector<128x1xf32>
    %7 = vector.extract_strided_slice %3 {offsets = [0, 3], sizes = [128, 1], strides = [1, 1]} : vector<128x4xf32> to vector<128x1xf32>
    %c0_4 = arith.constant 0 : index
    %c0_5 = arith.constant 0 : index
    %8 = vector.load %arg3[%c0_4, %c0_5] : memref<128x128xbf16, #tpu.memory_space<vmem>>, vector<128x128xbf16>
    %cst = arith.constant dense<0.000000e+00> : vector<128x512xf32>
    %9 = tpu.matmul %8, %2, %cst {dimension_numbers = #tpu.dot_dimension_numbers<[1], [0], [0], [1], [0, 0, 1, 1], [], []>} : vector<128x128xbf16>, vector<128x512xbf16>, vector<128x512xf32> -> vector<128x512xf32>
    %10 = vector.broadcast %4 : vector<128x1xf32> to vector<128x512xf32>
    %11 = arith.addf %9, %10 : vector<128x512xf32>
    %cst_6 = arith.constant 0.000000e+00 : f32
    %12 = vector.broadcast %cst_6 : f32 to vector<128x512xf32>
    %13 = arith.maximumf %11, %12 : vector<128x512xf32>
    %c0_7 = arith.constant 0 : index
    %c0_8 = arith.constant 0 : index
    %14 = vector.load %arg4[%c0_7, %c0_8] : memref<128x128xbf16, #tpu.memory_space<vmem>>, vector<128x128xbf16>
    %15 = arith.truncf %13 : vector<128x512xf32> to vector<128x512xbf16>
    %cst_9 = arith.constant dense<0.000000e+00> : vector<128x512xf32>
    %16 = tpu.matmul %14, %15, %cst_9 {dimension_numbers = #tpu.dot_dimension_numbers<[1], [0], [0], [1], [0, 0, 1, 1], [], []>} : vector<128x128xbf16>, vector<128x512xbf16>, vector<128x512xf32> -> vector<128x512xf32>
    %17 = vector.broadcast %5 : vector<128x1xf32> to vector<128x512xf32>
    %18 = arith.addf %16, %17 : vector<128x512xf32>
    %19 = arith.addf %18, %1 : vector<128x512xf32>
    %cst_10 = arith.constant dense<0.000000e+00> : vector<512xf32>
    %20 = vector.multi_reduction <add>, %19, %cst_10 [0] : vector<128x512xf32> to vector<512xf32>
    %21 = vector.shape_cast %20 : vector<512xf32> to vector<1x512xf32>
    %cst_11 = arith.constant 7.812500e-03 : f32
    %22 = vector.broadcast %cst_11 : f32 to vector<1x512xf32>
    %23 = arith.mulf %21, %22 : vector<1x512xf32>
    %24 = arith.mulf %19, %19 : vector<128x512xf32>
    %cst_12 = arith.constant dense<0.000000e+00> : vector<512xf32>
    %25 = vector.multi_reduction <add>, %24, %cst_12 [0] : vector<128x512xf32> to vector<512xf32>
    %26 = vector.shape_cast %25 : vector<512xf32> to vector<1x512xf32>
    %cst_13 = arith.constant 7.812500e-03 : f32
    %27 = vector.broadcast %cst_13 : f32 to vector<1x512xf32>
    %28 = arith.mulf %26, %27 : vector<1x512xf32>
    %29 = arith.mulf %23, %23 : vector<1x512xf32>
    %30 = arith.subf %28, %29 : vector<1x512xf32>
    %cst_14 = arith.constant 0.000000e+00 : f32
    %31 = vector.broadcast %cst_14 : f32 to vector<1x512xf32>
    %32 = arith.maximumf %30, %31 : vector<1x512xf32>
    %33 = vector.broadcast %23 : vector<1x512xf32> to vector<128x512xf32>
    %34 = arith.subf %19, %33 : vector<128x512xf32>
    %cst_15 = arith.constant 9.99999974E-6 : f32
    %35 = vector.broadcast %cst_15 : f32 to vector<1x512xf32>
    %36 = arith.addf %32, %35 : vector<1x512xf32>
    %37 = math.rsqrt %36 : vector<1x512xf32>
    %38 = vector.broadcast %37 : vector<1x512xf32> to vector<128x512xf32>
    %39 = arith.mulf %34, %38 : vector<128x512xf32>
    %40 = vector.broadcast %6 : vector<128x1xf32> to vector<128x512xf32>
    %41 = arith.mulf %39, %40 : vector<128x512xf32>
    %42 = vector.broadcast %7 : vector<128x1xf32> to vector<128x512xf32>
    %43 = arith.addf %41, %42 : vector<128x512xf32>
    %c0_16 = arith.constant 0 : index
    %c0_17 = arith.constant 0 : index
    %c0_18 = arith.constant 0 : index
    %44 = vector.load %arg6[%c0_16, %c0_17, %c0_18] : memref<1x128x512xf32, #tpu.memory_space<vmem>>, vector<1x128x512xf32>
    %45 = vector.shape_cast %44 : vector<1x128x512xf32> to vector<128x512xf32>
    %46 = vector.shape_cast %43 : vector<128x512xf32> to vector<1x128x512xf32>
    tpu.vector_store %arg6[%c0_16, %c0_17, %c0_18], %46 {strides = array<i32>} : memref<1x128x512xf32, #tpu.memory_space<vmem>>, vector<1x128x512xf32>,
    return
  }
  func.func @transform_0(%arg0: i32, %arg1: i32) -> (i32, i32, i32) {
    %c0_i32 = arith.constant 0 : i32
    %c0_i32_0 = arith.constant 0 : i32
    return %arg0, %c0_i32, %arg1 : i32, i32, i32
  }
  func.func @transform_1(%arg0: i32, %arg1: i32) -> (i32, i32) {
    %c0_i32 = arith.constant 0 : i32
    %c0_i32_0 = arith.constant 0 : i32
    %c0_i32_1 = arith.constant 0 : i32
    return %c0_i32, %c0_i32_0 : i32, i32
  }
  func.func @transform_2(%arg0: i32, %arg1: i32) -> (i32, i32) {
    %c0_i32 = arith.constant 0 : i32
    %c0_i32_0 = arith.constant 0 : i32
    %c0_i32_1 = arith.constant 0 : i32
    return %c0_i32, %c0_i32_0 : i32, i32
  }
  func.func @transform_3(%arg0: i32, %arg1: i32) -> (i32, i32) {
    %c0_i32 = arith.constant 0 : i32
    %c0_i32_0 = arith.constant 0 : i32
    %c0_i32_1 = arith.constant 0 : i32
    return %c0_i32, %c0_i32_0 : i32, i32
  }
  func.func @transform_4(%arg0: i32, %arg1: i32) -> (i32, i32, i32) {
    %c0_i32 = arith.constant 0 : i32
    %c0_i32_0 = arith.constant 0 : i32
    return %arg0, %c0_i32, %arg1 : i32, i32, i32
  }
}

</mosaic_0001>

<bundles_post_ra>
// kernel: tpu_custom_call.1
= control target key start
LH: loop header
LB: loop body
LE: loop exit
PB: predicated region body
PF: predicated region fallthrough
CT: control target
= control target key end

     0   :  { %9 = vsyncpa [#allocation3], 0  ;;  %s4087_s0 = inlined_call_operand.hbm [shape: f32[2,128,512], index: 0, kind: input, shape index: {}]   ;;  %s4088_s1 = inlined_call_operand.vmem [shape: bf16[128,128], index: 1, kind: input, shape index: {}]   ;;  %s4089_s2 = inlined_call_operand.vmem [shape: bf16[128,128], index: 2, kind: input, shape index: {}]   ;;  %s4090_s3 = inlined_call_operand.vmem [shape: f32[128,4], index: 3, kind: input, shape index: {}]   ;;  %s4091_s4 = inlined_call_operand.hbm [shape: f32[2,128,512], index: 4, kind: output, shape index: {}]  }
   0x1   :  { %11 = vsyncpa [#allocation3 + $0x1], 0 }
   0x2   :  { %12 = vsyncpa [#allocation4], 0 }
   0x3   :  { %14 = vsyncpa [#allocation4 + $0x1], 0  ;;  %s2384_s15 = smov 0   ;;  %s2386_s16 = smov 0  }
   0x4   :  { %s2388_s17 = smov 0   ;;  %s2390_s18 = smov 0  }
   0x5   :  { %s2392_s19 = smov 0   ;;  %s2394_s20 = smov 0  }
   0x6 LB: > { %s2044_s21 = sadd.s32 4294967295, %s2347_s20   ;;  %s2045_s22 = sadd.s32 4294967294, %s2347_s20   ;;  %s2347_s20 = sphi %s2394_s20, %s20_s20   ;;  %s2343_s19 = sphi %s2392_s19, %s4450_s19   ;;  %s2339_s18 = sphi %s2390_s18, %s4449_s18   ;;  %s2335_s17 = sphi %s2388_s17, %s4448_s17   ;;  %s2331_s16 = sphi %s2386_s16, %s4447_s16   ;;  %s2327_s15 = sphi %s2384_s15, %s4446_s15  }
   0x7   : > { %s32_s23 = sadd.s32 1, %s2343_s19  ;;  %s41_s24 = sadd.s32 1, %s2335_s17 }
   0x8   : > { %p34_p0 = scmp.ge.s32.totalorder %s32_s23, 2  ;;  %p48_p1 = scmp.ne.s32.totalorder %s2335_s17, %s2331_s16 }
   0x9   : > { %p49_p2 = scmp.eq.s32.totalorder %s2347_s20, 0  ;;  %p54_p3 = scmp.ne.s32.totalorder %s2331_s16, %s2327_s15 }
   0xa   : > { %s4452_s23 = smov (%p34_p0, %s32_s23), 0  ;;  %p55_p5 = scmp.eq.s32.totalorder %s2044_s21, 0 }
   0xb   : > { %p2425_p4 = por %p49_p2, %p48_p1  ;;  %s36_s26 = ssub.s32 %s2343_s19, %s4452_s23 }
   0xc   : > { %p143_p6 = scmp.eq.s32.totalorder %s2044_s21, 1  ;;  %p39_p7 = scmp.eq.s32.totalorder %s36_s26, 0 }
   0xd   : > { %p2431_p8 = por %p55_p5, %p54_p3  ;;  %p149_p10 = scmp.eq.s32.totalorder %s2045_s22, 1 }
   0xe   : > { %p2435_p9 = por %p143_p6, %p48_p1  ;;  %p2089_p13 = scmp.lt.s32.totalorder %s2347_s20, 2 }
   0xf   : > { %s2440_s29 = scalar_select %p39_p7, %s2335_s17, %s41_s24  }
  0x10   : > { %p2442_p11 = por %p149_p10, %p54_p3  ;;  %s178_s5 = sand.u32 1, %s2335_s17  }
  0x11   : > { %s2048_s6 = sshll.u32 %s178_s5, 9  ;;  %s2075_s7 = sshll.u32 %s2343_s19, 13 }
  0x12   : > { %s190_s10 = scalar_lea.hbm %s4087_s0, %s2075_s7  ;;  %s182_s11 = scalar_lea.vmem [#allocation2], %s2048_s6 }
  0x13   : > { %s191_s12 = sshll.u32 %s182_s11, 4  ;;  %p2455_p0 = pnand %p2089_p13, %p2425_p4  ;;  %s192_s12 = int_to_ptr.vmem [resolvable:$true] %s191_s12 }
  0x14   : > { %p2051_p1 = scmp.ge.s32.totalorder %s2347_s20, 1  ;;  %s179_s14 = scalar_lea.sflag [#allocation3], %s178_s5 }
  0x15   : > { %p2241_p2 = pneg %p2455_p0  ;;  %s2252_s21 = scalar_lea.vmem %s192_s12, 8192 }
  0x16   : > { %p2253_p3 = scmp.ne.s32.totalorder %s192_s12, %s2252_s21  ;;  %s2349_s22 = smov [#allocation2]  }
  0x17   : > { %s2257_s24 = sshll.u32 %s2349_s22, 4  ;;  %s2258_s24 = int_to_ptr.vmem [resolvable:$false] %s2257_s24 }
  0x18   : > { %p2255_p5 = pnand %p2253_p3, %p2241_p2  ;;  %s2259_s26 = scalar_lea.vmem %s2258_s24, 16384 }
  0x19   : > { %p2260_p7 = scmp.lt.s32.totalorder %s192_s12, %s2258_s24  ;;  %p2261_p10 = scmp.lt.s32.totalorder %s2259_s26, %s2252_s21 }
  0x1a   : > { %p2256_p6 = pneg %p2255_p5 }
  0x1b   : > { %p2262_p12 = por %p2261_p10, %p2260_p7 }
  0x1d   : > { %p2263_p4 = pnand %p2262_p12, %p2256_p6 }
  0x1f   : > { %2266 = shalt.err (!%p2263_p4)
}
  0x20   : > { %s2350_s25 = smov 512   ;;  %s2351_s5 = smov 32  }
  0x21   : > { %2084 = dma.hbm_to_vmem [thread:$0]  (!%p2455_p0), %s190_s10, 8192, %s192_s12, %s179_s14, %s2350_s25, %s2350_s25, %s2351_s5  }
  0x22   : > { %p199_p13 = scmp.lt.s32.totalorder %s2347_s20, 3 }
  0x24   : > { %p200_p2 = pnand %p2051_p1, %p199_p13 }
  0x26   : > { %203 = sbr.rel (%p200_p2) target bundleno = 772 (0x304), region = 36 }
  0x2b   : > { %s2468_s6 = sand.u32 1, %s2331_s16  }
  0x2c   : > { %s2052_s7 = sshll.u32 %s2468_s6, 9  ;;  %s206_s8 = scalar_lea.sflag [#allocation3], %s2468_s6 }
  0x2d   : > { %s2474_s9 = scalar_lea.vmem [#allocation2], %s2052_s7 }
  0x2e   : > { %2318 = dma.done.wait (%p2431_p8), %s206_s8, 8192  }
  0x2f   : > { %2320 = vsyncadd (%p2431_p8), %s206_s8, 4294959104  ;;  %v4092_v0 = vmov 0   ;;  %v294_v1 = vld [vmem:[%s2474_s9 + $0x1c8] sm:$0xff]  ;;  %v296_v3 = vld [vmem:[%s2474_s9 + $0x1d8] sm:$0xff]  ;;  %s1942_s11 = scalar_lea.sflag [#allocation4], %s2468_s6  ;;  %s2356_s13 = smov [#allocation5]  }
  0x30   : > { %525 = vmatprep.mubr.bf16.mxu0 %v4092_v0  ;;  %638 = vmatprep.mubr.bf16.mxu1 %v4092_v0  ;;  %v298_v2 = vld [vmem:[%s2474_s9 + $0x1e8] sm:$0xff]  ;;  %v300_v5 = vld [vmem:[%s2474_s9 + $0x1f8] sm:$0xff]  ;;  %v293_v6 = vld [vmem:[%s2474_s9 + $0x1c0] sm:$0xff]  ;;  %s2271_s14 = sshll.u32 %s2356_s13, 4  ;;  %s2272_s14 = int_to_ptr.vmem [resolvable:$false] %s2271_s14 }
  0x31   : > { %2147 = vset.pattern.permute.xlu0 %v4092_v0  ;;  %2148 = vset.pattern.permute.xlu1 %v4092_v0  ;;  %v330_v4 = vpack.c.bf16 %v298_v2, %v294_v1  ;;  %v297_v7 = vld [vmem:[%s2474_s9 + $0x1e0] sm:$0xff]  ;;  %v332_v8 = vpack.c.bf16 %v300_v5, %v296_v3  ;;  %v295_v10 = vld [vmem:[%s2474_s9 + $0x1d0] sm:$0xff]  ;;  %v286_v12 = vld [vmem:[%s2474_s9 + $0x188] sm:$0xff]  ;;  %s2273_s21 = scalar_lea.vmem %s2272_s14, 16384 }
  0x32   : > { %v329_v9 = vpack.c.bf16 %v297_v7, %v293_v6  ;;  %v299_v11 = vld [vmem:[%s2474_s9 + $0x1f0] sm:$0xff]  ;;  %v290_v14 = vld [vmem:[%s2474_s9 + $0x1a8] sm:$0xff]  ;;  %v288_v15 = vld [vmem:[%s2474_s9 + $0x198] sm:$0xff] }
  0x33   : > { %493 = vmatprep.subr.bf16.mxu0 %v330_v4  ;;  %v331_v13 = vpack.c.bf16 %v299_v11, %v295_v10  ;;  %v292_v16 = vld [vmem:[%s2474_s9 + $0x1b8] sm:$0xff]  ;;  %606 = vmatprep.subr.bf16.mxu1 %v332_v8  ;;  %v326_v17 = vpack.c.bf16 %v290_v14, %v286_v12  ;;  %v285_v19 = vld [vmem:[%s2474_s9 + $0x180] sm:$0xff]  ;;  %v287_v21 = vld [vmem:[%s2474_s9 + $0x190] sm:$0xff] }
  0x34   : > { %494 = vmatpush1.bf16.msra.mxu0 %v329_v9  ;;  %v328_v18 = vpack.c.bf16 %v292_v16, %v288_v15  ;;  %v289_v20 = vld [vmem:[%s2474_s9 + $0x1a0] sm:$0xff]  ;;  %v291_v23 = vld [vmem:[%s2474_s9 + $0x1b0] sm:$0xff]  ;;  %v278_v24 = vld [vmem:[%s2474_s9 + $0x148] sm:$0xff] }
  0x35   : > { %607 = vmatpush1.bf16.msra.mxu1 %v331_v13  ;;  %v325_v22 = vpack.c.bf16 %v289_v20, %v285_v19  ;;  %v282_v25 = vld [vmem:[%s2474_s9 + $0x168] sm:$0xff]  ;;  %495 = vmatprep.subr.bf16.mxu0 %v326_v17  ;;  %v327_v26 = vpack.c.bf16 %v291_v23, %v287_v21  ;;  %v280_v28 = vld [vmem:[%s2474_s9 + $0x158] sm:$0xff]  ;;  %v277_v30 = vld [vmem:[%s2474_s9 + $0x140] sm:$0xff] }
  0x36   : > { %608 = vmatprep.subr.bf16.mxu1 %v328_v18  ;;  %v322_v27 = vpack.c.bf16 %v282_v25, %v278_v24  ;;  %v284_v29 = vld [vmem:[%s2474_s9 + $0x178] sm:$0xff]  ;;  %v281_v32 = vld [vmem:[%s2474_s9 + $0x160] sm:$0xff]  ;;  %v279_v33 = vld [vmem:[%s2474_s9 + $0x150] sm:$0xff] }
  0x37   : > { %v324_v31 = vpack.c.bf16 %v284_v29, %v280_v28  ;;  %v283_v34 = vld [vmem:[%s2474_s9 + $0x170] sm:$0xff]  ;;  %v321_v35 = vpack.c.bf16 %v281_v32, %v277_v30  ;;  %v270_v36 = vld [vmem:[%s2474_s9 + $0x108] sm:$0xff]  ;;  %v272_v38 = vld [vmem:[%s2474_s9 + $0x118] sm:$0xff] }
  0x38   : > { %496 = vmatpush1.bf16.msra.mxu0 %v325_v22  ;;  %v274_v37 = vld [vmem:[%s2474_s9 + $0x128] sm:$0xff]  ;;  %v323_v39 = vpack.c.bf16 %v283_v34, %v279_v33  ;;  %v276_v41 = vld [vmem:[%s2474_s9 + $0x138] sm:$0xff]  ;;  %v269_v42 = vld [vmem:[%s2474_s9 + $0x100] sm:$0xff] }
  0x39   : > { %609 = vmatpush1.bf16.msra.mxu1 %v327_v26  ;;  %497 = vmatprep.subr.bf16.mxu0 %v322_v27  ;;  %v318_v40 = vpack.c.bf16 %v274_v37, %v270_v36  ;;  %v273_v43 = vld [vmem:[%s2474_s9 + $0x120] sm:$0xff]  ;;  %v320_v44 = vpack.c.bf16 %v276_v41, %v272_v38  ;;  %v271_v45 = vld [vmem:[%s2474_s9 + $0x110] sm:$0xff]  ;;  %v262_v47 = vld [vmem:[%s2474_s9 + $0xc8] sm:$0xff] }
  0x3a   : > { %610 = vmatprep.subr.bf16.mxu1 %v324_v31  ;;  %v275_v46 = vld [vmem:[%s2474_s9 + $0x130] sm:$0xff]  ;;  %v266_v48 = vld [vmem:[%s2474_s9 + $0xe8] sm:$0xff]  ;;  %v264_v49 = vld [vmem:[%s2474_s9 + $0xd8] sm:$0xff]  ;;  %v317_v51 = vpack.c.bf16 %v273_v43, %v269_v42 }
  0x3b   : > { %v268_v50 = vld [vmem:[%s2474_s9 + $0xf8] sm:$0xff]  ;;  %v319_v52 = vpack.c.bf16 %v275_v46, %v271_v45  ;;  %v314_v53 = vpack.c.bf16 %v266_v48, %v262_v47  ;;  %v261_v54 = vld [vmem:[%s2474_s9 + $0xc0] sm:$0xff]  ;;  %v263_v56 = vld [vmem:[%s2474_s9 + $0xd0] sm:$0xff] }
  0x3c   : > { %498 = vmatpush1.bf16.msra.mxu0 %v321_v35  ;;  %v265_v55 = vld [vmem:[%s2474_s9 + $0xe0] sm:$0xff]  ;;  %v316_v57 = vpack.c.bf16 %v268_v50, %v264_v49  ;;  %v267_v58 = vld [vmem:[%s2474_s9 + $0xf0] sm:$0xff]  ;;  %v254_v59 = vld [vmem:[%s2474_s9 + $0x88] sm:$0xff] }
  0x3d   : > { %611 = vmatpush1.bf16.msra.mxu1 %v323_v39  ;;  %499 = vmatprep.subr.bf16.mxu0 %v318_v40  ;;  %v258_v60 = vld [vmem:[%s2474_s9 + $0xa8] sm:$0xff]  ;;  %v256_v61 = vld [vmem:[%s2474_s9 + $0x98] sm:$0xff]  ;;  %v313_v63 = vpack.c.bf16 %v265_v55, %v261_v54  ;;  %v253_v1 = vld [vmem:[%s2474_s9 + $0x80] sm:$0xff]  ;;  %v315_v2 = vpack.c.bf16 %v267_v58, %v263_v56 }
  0x3e   : > { %612 = vmatprep.subr.bf16.mxu1 %v320_v44  ;;  %v260_v62 = vld [vmem:[%s2474_s9 + $0xb8] sm:$0xff]  ;;  %v310_v3 = vpack.c.bf16 %v258_v60, %v254_v59  ;;  %v257_v4 = vld [vmem:[%s2474_s9 + $0xa0] sm:$0xff]  ;;  %v255_v5 = vld [vmem:[%s2474_s9 + $0x90] sm:$0xff] }
  0x3f   : > { %v259_v6 = vld [vmem:[%s2474_s9 + $0xb0] sm:$0xff]  ;;  %v312_v7 = vpack.c.bf16 %v260_v62, %v256_v61  ;;  %v246_v8 = vld [vmem:[%s2474_s9 + $0x48] sm:$0xff]  ;;  %v248_v10 = vld [vmem:[%s2474_s9 + $0x58] sm:$0xff]  ;;  %v309_v14 = vpack.c.bf16 %v257_v4, %v253_v1 }
  0x40   : > { %500 = vmatpush1.bf16.msra.mxu0 %v317_v51  ;;  %v250_v9 = vld [vmem:[%s2474_s9 + $0x68] sm:$0xff]  ;;  %v252_v11 = vld [vmem:[%s2474_s9 + $0x78] sm:$0xff]  ;;  %v245_v12 = vld [vmem:[%s2474_s9 + $0x40] sm:$0xff]  ;;  %v311_v19 = vpack.c.bf16 %v259_v6, %v255_v5 }
  0x41   : > { %613 = vmatpush1.bf16.msra.mxu1 %v319_v52  ;;  %501 = vmatprep.subr.bf16.mxu0 %v314_v53  ;;  %v249_v13 = vld [vmem:[%s2474_s9 + $0x60] sm:$0xff]  ;;  %v247_v15 = vld [vmem:[%s2474_s9 + $0x50] sm:$0xff]  ;;  %v238_v17 = vld [vmem:[%s2474_s9 + $0x8] sm:$0xff]  ;;  %v306_v20 = vpack.c.bf16 %v250_v9, %v246_v8  ;;  %v308_v22 = vpack.c.bf16 %v252_v11, %v248_v10 }
  0x42   : > { %614 = vmatprep.subr.bf16.mxu1 %v316_v57  ;;  %v251_v16 = vld [vmem:[%s2474_s9 + $0x70] sm:$0xff]  ;;  %v242_v18 = vld [vmem:[%s2474_s9 + $0x28] sm:$0xff]  ;;  %v240_v21 = vld [vmem:[%s2474_s9 + $0x18] sm:$0xff]  ;;  %v305_v25 = vpack.c.bf16 %v249_v13, %v245_v12 }
  0x43   : > { %v244_v23 = vld [vmem:[%s2474_s9 + $0x38] sm:$0xff]  ;;  %v2545_v24 = vld [vmem:[%s2474_s9] sm:$0xff]  ;;  %v307_v27 = vpack.c.bf16 %v251_v16, %v247_v15  ;;  %v302_v28 = vpack.c.bf16 %v242_v18, %v238_v17  ;;  %v2551_v29 = vld [vmem:[%s2474_s9 + $0x10] sm:$0xff] }
  0x44   : > { %502 = vmatpush1.bf16.msra.mxu0 %v313_v63  ;;  %4196 = vst [vmem:[#allocation8_spill] sm:$0xff] %v2545_v24  ;;  %v2548_v26 = vld [vmem:[%s2474_s9 + $0x20] sm:$0xff]  ;;  %4198 = vst [vmem:[#allocation10_spill] sm:$0xff] %v2551_v29  ;;  %v304_v30 = vpack.c.bf16 %v244_v23, %v240_v21  ;;  %v2554_v31 = vld [vmem:[%s2474_s9 + $0x30] sm:$0xff] }
  0x45   : > { %615 = vmatpush1.bf16.msra.mxu1 %v315_v2  ;;  %503 = vmatprep.subr.bf16.mxu0 %v310_v3  ;;  %4197 = vst [vmem:[#allocation9_spill] sm:$0xff] %v2548_v26  ;;  %4199 = vst [vmem:[#allocation11_spill] sm:$0xff] %v2554_v31  ;;  %v2559_v32 = vld [vmem:[%s4090_s3 + $0x70] sm:$0xff]  ;;  %v301_v33 = vpack.c.bf16 %v2548_v26, %v2545_v24  ;;  %v2567_v34 = vld [vmem:[%s4090_s3 + $0x60] sm:$0xff]  ;;  %v303_v35 = vpack.c.bf16 %v2554_v31, %v2551_v29 }
  0x46   : > { %616 = vmatprep.subr.bf16.mxu1 %v312_v7  ;;  %4200 = vst [vmem:[#allocation12_spill] sm:$0xff] %v2559_v32  ;;  %437 = vperm.xlu0 %2147, %v2559_v32   ;;  %v2574_v36 = vld [vmem:[%s4090_s3 + $0x78] sm:$0xff]  ;;  %v2155_v37 = vld [vmem:[%s4088_s1] sm:$0xff]   ;;  %v2583_v38 = vld [vmem:[%s4090_s3 + $0x68] sm:$0xff] }
  0x47   : > { %4201 = vst [vmem:[#allocation13_spill] sm:$0xff] %v2574_v36  ;;  %427 = vperm.xlu1 %2148, %v2567_v34   ;;  %4202 = vst [vmem:[#allocation14_spill] sm:$0xff] %v2583_v38  ;;  %v2590_v39 = vld [vmem:[%s4090_s3 + $0x50] sm:$0xff]  ;;  %v2595_v40 = vld [vmem:[%s4090_s3 + $0x58] sm:$0xff] }
  0x48   : > { %504 = vmatpush1.bf16.msra.mxu0 %v309_v14  ;;  %4203 = vst [vmem:[#allocation15_spill] sm:$0xff] %v2595_v40  ;;  %v2601_v41 = vld [vmem:[%s4090_s3 + $0x40] sm:$0xff]  ;;  %v2156_v42 = vld [vmem:[%s4088_s1 + $0x8] sm:$0xff]   ;;  %v2619_v44 = vld [vmem:[%s4090_s3 + $0x30] sm:$0xff] }
  0x49   : > { %617 = vmatpush1.bf16.msra.mxu1 %v311_v19  ;;  %505 = vmatprep.subr.bf16.mxu0 %v306_v20  ;;  %v2611_v43 = vld [vmem:[%s4090_s3 + $0x48] sm:$0xff]  ;;  %4204 = vst [vmem:[#allocation16_spill] sm:$0xff] %v2619_v44  ;;  %v2624_v45 = vld [vmem:[%s4090_s3 + $0x38] sm:$0xff]  ;;  %v2633_v46 = vld [vmem:[%s4090_s3 + $0x20] sm:$0xff] }
  0x4a   : > { %618 = vmatprep.subr.bf16.mxu1 %v308_v22  ;;  %442 = vperm.xlu0 %2147, %v2574_v36   ;;  %4205 = vst [vmem:[#allocation17_spill] sm:$0xff] %v2633_v46  ;;  %v2157_v47 = vld [vmem:[%s4088_s1 + $0x10] sm:$0xff]   ;;  %v2641_v48 = vld [vmem:[%s4090_s3 + $0x28] sm:$0xff]  ;;  %v2653_v50 = vld [vmem:[%s4090_s3 + $0x18] sm:$0xff] }
  0x4b   : > { %432 = vperm.xlu1 %2148, %v2583_v38   ;;  %v2648_v49 = vld [vmem:[%s4090_s3 + $0x10] sm:$0xff]  ;;  %4207 = vst [vmem:[#allocation19_spill] sm:$0xff] %v2653_v50  ;;  %v2662_v51 = vld [vmem:[%s4090_s3] sm:$0xff]  ;;  %v2158_v52 = vld [vmem:[%s4088_s1 + $0x18] sm:$0xff]  }
  0x4c   : > { %506 = vmatpush1.bf16.msra.mxu0 %v305_v25  ;;  %4206 = vst [vmem:[#allocation18_spill] sm:$0xff] %v2648_v49  ;;  %4208 = vst [vmem:[#allocation20_spill] sm:$0xff] %v2662_v51  ;;  %v2670_v53 = vld [vmem:[%s4090_s3 + $0x8] sm:$0xff]  ;;  %v2159_v54 = vld [vmem:[%s4088_s1 + $0x20] sm:$0xff]  }
  0x4d   : > { %619 = vmatpush1.bf16.msra.mxu1 %v307_v27  ;;  %507 = vmatprep.subr.bf16.mxu0 %v302_v28  ;;  %4209 = vst [vmem:[#allocation21_spill] sm:$0xff] %v2670_v53  ;;  %v2160_v55 = vld [vmem:[%s4088_s1 + $0x28] sm:$0xff]   ;;  %v2161_v56 = vld [vmem:[%s4088_s1 + $0x30] sm:$0xff]   ;;  %v2162_v57 = vld [vmem:[%s4088_s1 + $0x38] sm:$0xff]  }
  0x4e   : > { %620 = vmatprep.subr.bf16.mxu1 %v304_v30  ;;  %417 = vperm.xlu0 %2147, %v2590_v39  }
  0x4f   : > { %422 = vperm.xlu1 %2148, %v2595_v40  }
  0x50   : > { %508 = vmatpush1.bf16.msra.mxu0 %v301_v33 }
  0x51   : > { %621 = vmatpush1.bf16.msra.mxu1 %v303_v35 }
  0x52   : > { %407 = vperm.xlu0 %2147, %v2601_v41  }
  0x53   : > { %526 = vmatmul.mubr.bf16.vlgmr.msra.gmra.mxu0 %v2155_v37  ;;  %412 = vperm.xlu1 %2148, %v2611_v43  }
  0x54   : > { %639 = vmatmul.mubr.bf16.vlgmr.msra.gmra.mxu1 %v2155_v37  ;;  %535 = vmatprep.mubr.bf16.mxu0 %v4092_v0 }
  0x55   : > { %648 = vmatprep.mubr.bf16.mxu1 %v4092_v0 }
  0x56   : > { %397 = vperm.xlu0 %2147, %v2619_v44  }
  0x57   : > { %402 = vperm.xlu1 %2148, %v2624_v45  }
  0x5a   : > { %387 = vperm.xlu0 %2147, %v2633_v46  }
  0x5b   : > { %536 = vmatmul.mubr.bf16.gmra.mxu0 %v2156_v42  ;;  %392 = vperm.xlu1 %2148, %v2641_v48  }
  0x5c   : > { %649 = vmatmul.mubr.bf16.gmra.mxu1 %v2156_v42  ;;  %545 = vmatprep.mubr.bf16.mxu0 %v4092_v0 }
  0x5d   : > { %658 = vmatprep.mubr.bf16.mxu1 %v4092_v0 }
  0x5e   : > { %377 = vperm.xlu0 %2147, %v2648_v49  }
  0x5f   : > { %382 = vperm.xlu1 %2148, %v2653_v50  }
  0x62   : > { %367 = vperm.xlu0 %2147, %v2662_v51  }
  0x63   : > { %546 = vmatmul.mubr.bf16.gmra.mxu0 %v2157_v47  ;;  %372 = vperm.xlu1 %2148, %v2670_v53  }
  0x64   : > { %659 = vmatmul.mubr.bf16.gmra.mxu1 %v2157_v47  ;;  %555 = vmatprep.mubr.bf16.mxu0 %v4092_v0 }
  0x65   : > { %668 = vmatprep.mubr.bf16.mxu1 %v4092_v0 }
  0x6b   : > { %556 = vmatmul.mubr.bf16.gmra.mxu0 %v2158_v52 }
  0x6c   : > { %669 = vmatmul.mubr.bf16.gmra.mxu1 %v2158_v52  ;;  %565 = vmatprep.mubr.bf16.mxu0 %v4092_v0 }
  0x6d   : > { %678 = vmatprep.mubr.bf16.mxu1 %v4092_v0 }
  0x73   : > { %566 = vmatmul.mubr.bf16.gmra.mxu0 %v2159_v54 }
  0x74   : > { %679 = vmatmul.mubr.bf16.gmra.mxu1 %v2159_v54  ;;  %575 = vmatprep.mubr.bf16.mxu0 %v4092_v0 }
  0x75   : > { %688 = vmatprep.mubr.bf16.mxu1 %v4092_v0 }
  0x7b   : > { %576 = vmatmul.mubr.bf16.gmra.mxu0 %v2160_v55 }
  0x7c   : > { %689 = vmatmul.mubr.bf16.gmra.mxu1 %v2160_v55  ;;  %585 = vmatprep.mubr.bf16.mxu0 %v4092_v0 }
  0x7d   : > { %698 = vmatprep.mubr.bf16.mxu1 %v4092_v0 }
  0x83   : > { %586 = vmatmul.mubr.bf16.gmra.mxu0 %v2161_v56 }
  0x84   : > { %699 = vmatmul.mubr.bf16.gmra.mxu1 %v2161_v56  ;;  %595 = vmatprep.mubr.bf16.mxu0 %v4092_v0 }
  0x85   : > { %708 = vmatprep.mubr.bf16.mxu1 %v4092_v0 }
  0x8b   : > { %596 = vmatmul.mubr.bf16.gmra.mxu0 %v2162_v57 }
  0x8c   : > { %709 = vmatmul.mubr.bf16.gmra.mxu1 %v2162_v57  ;;  %975 = vmatprep.mubr.bf16.mxu0 %v4092_v0 }
  0x8d   : > { %1088 = vmatprep.mubr.bf16.mxu1 %v4092_v0 }
  0xc1   : > { %v2696_v58 = vpop.permute.xlu0 %437 }
  0xc2   : > { %v2698_v59 = vpop.permute.xlu1 %427 }
  0xc5   : > { %v2700_v60 = vpop.permute.xlu0 %442 }
  0xc6   : > { %v2702_v61 = vpop.permute.xlu1 %432 }
  0xc9   : > { %v2704_v62 = vpop.permute.xlu0 %417 }
  0xca   : > { %v2706_v63 = vpop.permute.xlu1 %422 }
  0xcd   : > { %v2708_v1 = vpop.permute.xlu0 %407 }
  0xce   : > { %v2710_v2 = vpop.permute.xlu1 %412 }
  0xd1   : > { %v2712_v3 = vpop.permute.xlu0 %397 }
  0xd2   : > { %v2714_v4 = vpop.permute.xlu1 %402 }
  0xd5   : > { %v2716_v5 = vpop.permute.xlu0 %387 }
  0xd6   : > { %4210 = vst [vmem:[#allocation22_spill] sm:$0xff] %v2716_v5  ;;  %v2718_v6 = vpop.permute.xlu1 %392 }
  0xd7   : > { %4211 = vst [vmem:[#allocation23_spill] sm:$0xff] %v2718_v6 }
  0xd9   : > { %v378_v7 = vpop.permute.xlu0 %377 }
  0xda   : > { %v383_v8 = vpop.permute.xlu1 %382 }
  0xdd   : > { %v368_v9 = vpop.permute.xlu0 %367 }
  0xde   : > { %v373_v13 = vpop.permute.xlu1 %372 }
 0x113   : > { %v527_v10 = vpop.f32.mrf.mxu0 }
 0x114   : > { %v640_v11 = vpop.f32.mrf.mxu1  ;;  %v528_v14 = vadd.f32 %v527_v10, %v368_v9 }
 0x115   : > { %v529_v12 = vpop.f32.mrf.mxu0  ;;  %v641_v16 = vadd.f32 %v640_v11, %v368_v9 }
 0x116   : > { %v642_v15 = vpop.f32.mrf.mxu1  ;;  %v530_v18 = vadd.f32 %v529_v12, %v368_v9  ;;  %v719_v25 = vmax.f32 %v528_v14, 0.0 }
 0x117   : > { %v531_v17 = vpop.f32.mrf.mxu0  ;;  %v643_v21 = vadd.f32 %v642_v15, %v368_v9  ;;  %v721_v33 = vmax.f32 %v641_v16, 0.0 }
 0x118   : > { %v532_v19 = vadd.f32 %v531_v17, %v373_v13  ;;  %v644_v20 = vpop.f32.mrf.mxu1  ;;  %v720_v47 = vmax.f32 %v530_v18, 0.0 }
 0x119   : > { %v645_v22 = vadd.f32 %v644_v20, %v373_v13  ;;  %v533_v23 = vpop.f32.mrf.mxu0  ;;  %v722_v56 = vmax.f32 %v643_v21, 0.0 }
 0x11a   : > { %v723_v27 = vmax.f32 %v532_v19, 0.0  ;;  %v534_v28 = vadd.f32 %v533_v23, %v373_v13  ;;  %v646_v30 = vpop.f32.mrf.mxu1 }
 0x11b   : > { %v725_v35 = vmax.f32 %v645_v22, 0.0  ;;  %v647_v37 = vadd.f32 %v646_v30, %v373_v13  ;;  %v537_v42 = vpop.f32.mrf.mxu0 }
 0x11c   : > { %v2720_v52 = vpack.c.bf16 %v723_v27, %v719_v25  ;;  %v724_v54 = vmax.f32 %v534_v28, 0.0  ;;  %v650_v55 = vpop.f32.mrf.mxu1  ;;  %v538_v12 = vadd.f32 %v537_v42, %v378_v7 }
 0x11d   : > { %v2722_v57 = vpack.c.bf16 %v725_v35, %v721_v33  ;;  %v726_v10 = vmax.f32 %v647_v37, 0.0  ;;  %v539_v9 = vpop.f32.mrf.mxu0  ;;  %v651_v16 = vadd.f32 %v650_v55, %v378_v7 }
 0x11e   : > { %4212 = vst [vmem:[#allocation24_spill] sm:$0xff] %v2720_v52  ;;  %v2724_v11 = vpack.c.bf16 %v724_v54, %v720_v47  ;;  %v652_v14 = vpop.f32.mrf.mxu1  ;;  %v540_v13 = vadd.f32 %v539_v9, %v378_v7  ;;  %v727_v25 = vmax.f32 %v538_v12, 0.0 }
 0x11f   : > { %4213 = vst [vmem:[#allocation25_spill] sm:$0xff] %v2722_v57  ;;  %v2726_v15 = vpack.c.bf16 %v726_v10, %v722_v56  ;;  %v541_v17 = vpop.f32.mrf.mxu0  ;;  %v653_v20 = vadd.f32 %v652_v14, %v378_v7  ;;  %v729_v30 = vmax.f32 %v651_v16, 0.0 }
 0x120   : > { %4214 = vst [vmem:[#allocation26_spill] sm:$0xff] %v2724_v11  ;;  %v542_v19 = vadd.f32 %v541_v17, %v383_v8  ;;  %v654_v18 = vpop.f32.mrf.mxu1  ;;  %v728_v42 = vmax.f32 %v540_v13, 0.0  ;;  %v2353_v17 = vmov 1  }
 0x121   : > { %4215 = vst [vmem:[#allocation27_spill] sm:$0xff] %v2726_v15  ;;  %v655_v22 = vadd.f32 %v654_v18, %v383_v8  ;;  %v543_v23 = vpop.f32.mrf.mxu0  ;;  %v730_v56 = vmax.f32 %v653_v20, 0.0  ;;  %2150 = vset.pattern.permute.xlu1 %v2353_v17  ;;  %2149 = vset.pattern.permute.xlu0 %v2353_v17 }
 0x122   : > { %v731_v21 = vmax.f32 %v542_v19, 0.0  ;;  %v544_v27 = vadd.f32 %v543_v23, %v383_v8  ;;  %v656_v28 = vpop.f32.mrf.mxu1  ;;  %836 = vperm.xlu1 %2150, %v2670_v53   ;;  %832 = vperm.xlu0 %2149, %v2662_v51  }
 0x123   : > { %v733_v33 = vmax.f32 %v655_v22, 0.0  ;;  %v657_v35 = vadd.f32 %v656_v28, %v383_v8  ;;  %v2728_v37 = vpop.f32.mrf.mxu0 }
 0x124   : > { %v2730_v47 = vpack.c.bf16 %v731_v21, %v727_v25  ;;  %v732_v54 = vmax.f32 %v544_v27, 0.0  ;;  %v2732_v55 = vpop.f32.mrf.mxu1 }
 0x125   : > { %4217 = vst [vmem:[#allocation29_spill] sm:$0xff] %v2732_v55  ;;  %v2734_v10 = vpack.c.bf16 %v733_v33, %v729_v30  ;;  %v734_v7 = vmax.f32 %v657_v35, 0.0  ;;  %v2736_v9 = vpop.f32.mrf.mxu0 }
 0x126   : > { %4216 = vst [vmem:[#allocation28_spill] sm:$0xff] %v2730_v47  ;;  %v2738_v12 = vpack.c.bf16 %v732_v54, %v728_v42  ;;  %v2740_v14 = vpop.f32.mrf.mxu1  ;;  %840 = vperm.xlu1 %2150, %v2648_v49   ;;  %844 = vperm.xlu0 %2149, %v2653_v50  }
 0x127   : > { %4218 = vst [vmem:[#allocation30_spill] sm:$0xff] %v2734_v10  ;;  %v2742_v16 = vpack.c.bf16 %v734_v7, %v730_v56  ;;  %v2744_v8 = vpop.f32.mrf.mxu0 }
 0x128   : > { %4219 = vst [vmem:[#allocation31_spill] sm:$0xff] %v2738_v12  ;;  %4221 = vst [vmem:[#allocation33_spill] sm:$0xff] %v2744_v8  ;;  %v2746_v13 = vpop.f32.mrf.mxu1 }
 0x129   : > { %4220 = vst [vmem:[#allocation32_spill] sm:$0xff] %v2742_v16  ;;  %4222 = vst [vmem:[#allocation34_spill] sm:$0xff] %v2746_v13  ;;  %v553_v19 = vpop.f32.mrf.mxu0  ;;  %v2354_v13 = vmov 2  }
 0x12a   : > { %v666_v18 = vpop.f32.mrf.mxu1  ;;  %848 = vperm.xlu1 %2150, %v2633_v46   ;;  %852 = vperm.xlu0 %2149, %v2641_v48  }
 0x12b   : > { %v2750_v20 = vpop.f32.mrf.mxu0 }
 0x12c   : > { %4223 = vst [vmem:[#allocation35_spill] sm:$0xff] %v2750_v20  ;;  %v2752_v22 = vpop.f32.mrf.mxu1 }
 0x12d   : > { %4224 = vst [vmem:[#allocation36_spill] sm:$0xff] %v2752_v22  ;;  %v559_v23 = vpop.f32.mrf.mxu0 }
 0x12e   : > { %v672_v25 = vpop.f32.mrf.mxu1  ;;  %856 = vperm.xlu1 %2150, %v2619_v44   ;;  %860 = vperm.xlu0 %2149, %v2624_v45   ;;  %v2807_v20 = vadd.f32 %v559_v23, %v2712_v3 }
 0x12f   : > { %v2756_v21 = vpop.f32.mrf.mxu0 }
 0x130   : > { %v2758_v27 = vpop.f32.mrf.mxu1  ;;  %4230 = vst [vmem:[#allocation42_spill] sm:$0xff] %v2807_v20 }
 0x131   : > { %v563_v28 = vpop.f32.mrf.mxu0 }
 0x132   : > { %v676_v30 = vpop.f32.mrf.mxu1  ;;  %864 = vperm.xlu1 %2150, %v2601_v41   ;;  %868 = vperm.xlu0 %2149, %v2611_v43  }
 0x133   : > { %v2762_v33 = vpop.f32.mrf.mxu0 }
 0x134   : > { %v2764_v35 = vpop.f32.mrf.mxu1 }
 0x135   : > { %v569_v42 = vpop.f32.mrf.mxu0 }
 0x136   : > { %v682_v54 = vpop.f32.mrf.mxu1  ;;  %872 = vperm.xlu1 %2150, %v2590_v39   ;;  %876 = vperm.xlu0 %2149, %v2595_v40  }
 0x137   : > { %v2768_v56 = vpop.f32.mrf.mxu0 }
 0x138   : > { %v2770_v7 = vpop.f32.mrf.mxu1 }
 0x139   : > { %v573_v17 = vpop.f32.mrf.mxu0 }
 0x13a   : > { %v686_v0 = vpop.f32.mrf.mxu1  ;;  %880 = vperm.xlu1 %2150, %v2567_v34   ;;  %884 = vperm.xlu0 %2149, %v2583_v38   ;;  %v2790_v38 = vadd.f32 %v2728_v37, %v2716_v5  ;;  %v2810_v37 = vadd.f32 %v672_v25, %v2712_v3 }
 0x13b   : > { %v2774_v31 = vpop.f32.mrf.mxu0  ;;  %v2830_v25 = vadd.f32 %v686_v0, %v2710_v2 }
 0x13c   : > { %v2776_v26 = vpop.f32.mrf.mxu1  ;;  %4225 = vst [vmem:[#allocation37_spill] sm:$0xff] %v2790_v38  ;;  %4231 = vst [vmem:[#allocation43_spill] sm:$0xff] %v2810_v37  ;;  %v2816_v38 = vadd.f32 %v676_v30, %v2714_v4 }
 0x13d   : > { %v579_v29 = vpop.f32.mrf.mxu0 }
 0x13e   : > { %v692_v24 = vpop.f32.mrf.mxu1  ;;  %888 = vperm.xlu1 %2150, %v2559_v32   ;;  %892 = vperm.xlu0 %2149, %v2574_v36   ;;  %v2794_v36 = vadd.f32 %v2736_v9, %v2716_v5  ;;  %v2798_v32 = vadd.f32 %v2740_v14, %v2716_v5  ;;  %v2813_v9 = vadd.f32 %v563_v28, %v2714_v4 }
 0x13f   : > { %v581_v57 = vpop.f32.mrf.mxu0  ;;  %4232 = vst [vmem:[#allocation44_spill] sm:$0xff] %v2816_v38  ;;  %v2833_v28 = vadd.f32 %v579_v29, %v2704_v62  ;;  %v2836_v30 = vadd.f32 %v692_v24, %v2704_v62 }
 0x140   : > { %v694_v52 = vpop.f32.mrf.mxu1  ;;  %4226 = vst [vmem:[#allocation38_spill] sm:$0xff] %v2794_v36  ;;  %4227 = vst [vmem:[#allocation39_spill] sm:$0xff] %v2798_v32  ;;  %v2825_v32 = vadd.f32 %v573_v17, %v2710_v2 }
 0x141   : > { %v583_v15 = vpop.f32.mrf.mxu0  ;;  %v2842_v17 = vadd.f32 %v694_v52, %v2706_v63 }
 0x142   : > { %v696_v11 = vpop.f32.mrf.mxu1  ;;  %2151 = vset.pattern.permute.xlu1 %v2354_v13  ;;  %2152 = vset.pattern.permute.xlu0 %v2354_v13  ;;  %v2801_v13 = vadd.f32 %v553_v19, %v2718_v6  ;;  %v2819_v19 = vadd.f32 %v569_v42, %v2708_v1  ;;  %v2839_v42 = vadd.f32 %v581_v57, %v2706_v63 }
 0x143   : > { %v587_v10 = vpop.f32.mrf.mxu0  ;;  %1622 = vperm.xlu1 %2151, %v2662_v51   ;;  %1626 = vperm.xlu0 %2152, %v2670_v53   ;;  %v2804_v51 = vadd.f32 %v666_v18, %v2718_v6  ;;  %v2822_v18 = vadd.f32 %v682_v54, %v2708_v1 }
 0x144   : > { %v2782_v47 = vpop.f32.mrf.mxu1  ;;  %4228 = vst [vmem:[#allocation40_spill] sm:$0xff] %v2801_v13  ;;  %v588_v0 = vadd.f32 %v587_v10, %v2698_v59 }
 0x145   : > { %v589_v16 = vpop.f32.mrf.mxu0  ;;  %4229 = vst [vmem:[#allocation41_spill] sm:$0xff] %v2804_v51 }
 0x146   : > { %v702_v12 = vpop.f32.mrf.mxu1 }
 0x147   : > { %v591_v55 = vpop.f32.mrf.mxu0  ;;  %1630 = vperm.xlu1 %2151, %v2648_v49   ;;  %1638 = vperm.xlu0 %2152, %v2633_v46   ;;  %v2845_v49 = vadd.f32 %v583_v15, %v2706_v63  ;;  %v2848_v46 = vadd.f32 %v696_v11, %v2706_v63  ;;  %v590_v11 = vadd.f32 %v589_v16, %v2698_v59 }
 0x148   : > { %v704_v40 = vpop.f32.mrf.mxu1  ;;  %v703_v10 = vadd.f32 %v702_v12, %v2698_v59 }
 0x149   : > { %v593_v22 = vpop.f32.mrf.mxu0 }
 0x14a   : > { %v706_v8 = vpop.f32.mrf.mxu1  ;;  %v594_v36 = vadd.f32 %v593_v22, %v2702_v61 }
 0x14b   : > { %v597_v53 = vpop.f32.mrf.mxu0  ;;  %v707_v24 = vadd.f32 %v706_v8, %v2702_v61  ;;  %1634 = vperm.xlu1 %2151, %v2653_v50   ;;  %1646 = vperm.xlu0 %2152, %v2619_v44  }
 0x14c   : > { %v710_v14 = vpop.f32.mrf.mxu1  ;;  %v598_v52 = vadd.f32 %v597_v53, %v2696_v58  ;;  %v592_v53 = vadd.f32 %v591_v55, %v2702_v61  ;;  %v772_v37 = vmax.f32 %v594_v36, 0.0  ;;  %v768_v55 = vmax.f32 %v590_v11, 0.0 }
 0x14d   : > { %v599_v23 = vpop.f32.mrf.mxu0  ;;  %v711_v8 = vadd.f32 %v710_v14, %v2696_v58  ;;  %v774_v6 = vmax.f32 %v707_v24, 0.0 }
 0x14e   : > { %v712_v54 = vpop.f32.mrf.mxu1  ;;  %v600_v57 = vadd.f32 %v599_v23, %v2696_v58  ;;  %v775_v16 = vmax.f32 %v598_v52, 0.0 }
 0x14f   : > { %v601_v29 = vpop.f32.mrf.mxu0  ;;  %v713_v15 = vadd.f32 %v712_v54, %v2696_v58  ;;  %v705_v54 = vadd.f32 %v704_v40, %v2702_v61  ;;  %1642 = vperm.xlu1 %2151, %v2641_v48   ;;  %1654 = vperm.xlu0 %2152, %v2601_v41   ;;  %v701_v58 = vadd.f32 %v2782_v47, %v2698_v59  ;;  %v777_v40 = vmax.f32 %v711_v8, 0.0 }
 0x150   : > { %v602_v5 = vadd.f32 %v601_v29, %v2700_v60  ;;  %v714_v51 = vpop.f32.mrf.mxu1  ;;  %v776_v50 = vmax.f32 %v600_v57, 0.0  ;;  %v824_v57 = vpack.c.bf16 %v772_v37, %v768_v55  ;;  %v568_v37 = vadd.f32 %v2762_v33, %v2708_v1  ;;  %v4239_v55 = vld [vmem:[#allocation34_spill] sm:$0xff] }
 0x151   : > { %v715_v13 = vadd.f32 %v714_v51, %v2700_v60  ;;  %v603_v63 = vpop.f32.mrf.mxu0  ;;  %v778_v38 = vmax.f32 %v713_v15, 0.0  ;;  %v773_v24 = vmax.f32 %v705_v54, 0.0  ;;  %v578_v15 = vadd.f32 %v2774_v31, %v2704_v62  ;;  %v4236_v54 = vld [vmem:[#allocation33_spill] sm:$0xff] }
 0x152   : > { %v604_v22 = vadd.f32 %v603_v63, %v2700_v60  ;;  %v716_v23 = vpop.f32.mrf.mxu1  ;;  %v779_v29 = vmax.f32 %v602_v5, 0.0  ;;  %v770_v5 = vmax.f32 %v703_v10, 0.0  ;;  %v766_v63 = vmax.f32 %v2848_v46, 0.0 }
 0x153   : > { %v717_v51 = vadd.f32 %v716_v23, %v2700_v60  ;;  %v781_v20 = vmax.f32 %v715_v13, 0.0  ;;  %v771_v60 = vmax.f32 %v592_v53, 0.0  ;;  %v764_v13 = vmax.f32 %v2845_v49, 0.0  ;;  %1650 = vperm.xlu1 %2151, %v2624_v45   ;;  %1662 = vperm.xlu0 %2152, %v2590_v39   ;;  %v4234_v23 = vld [vmem:[#allocation44_spill] sm:$0xff] }
 0x154   : > { %v780_v44 = vmax.f32 %v604_v22, 0.0  ;;  %v827_v36 = vpack.c.bf16 %v779_v29, %v775_v16  ;;  %v767_v22 = vmax.f32 %v588_v0, 0.0  ;;  %v826_v59 = vpack.c.bf16 %v774_v6, %v770_v5 }
 0x155   : > { %v782_v12 = vmax.f32 %v717_v51, 0.0  ;;  %v829_v52 = vpack.c.bf16 %v781_v20, %v777_v40  ;;  %v760_v49 = vmax.f32 %v2833_v28, 0.0  ;;  %v685_v31 = vadd.f32 %v2770_v7, %v2710_v2  ;;  %v4237_v51 = vld [vmem:[#allocation36_spill] sm:$0xff] }
 0x156   : > { %v828_v61 = vpack.c.bf16 %v780_v44, %v776_v50  ;;  %v572_v44 = vadd.f32 %v2768_v56, %v2710_v2  ;;  %v769_v50 = vmax.f32 %v701_v58, 0.0  ;;  %v762_v46 = vmax.f32 %v2836_v30, 0.0 }
 0x157   : > { %v830_v14 = vpack.c.bf16 %v782_v12, %v778_v38  ;;  %v691_v38 = vadd.f32 %v2776_v26, %v2704_v62  ;;  %v763_v6 = vmax.f32 %v2839_v42, 0.0  ;;  %v823_v47 = vpack.c.bf16 %v771_v60, %v767_v22  ;;  %1658 = vperm.xlu1 %2151, %v2611_v43   ;;  %1670 = vperm.xlu0 %2152, %v2567_v34  }
 0x158   : > { %943 = vmatprep.subr.bf16.mxu0 %v828_v61  ;;  %v756_v20 = vmax.f32 %v2825_v32, 0.0  ;;  %v765_v26 = vmax.f32 %v2842_v17, 0.0  ;;  %v820_v62 = vpack.c.bf16 %v764_v13, %v760_v49  ;;  %v825_v56 = vpack.c.bf16 %v773_v24, %v769_v50  ;;  %v4240_v61 = vld [vmem:[#allocation43_spill] sm:$0xff]  ;;  %v4242_v13 = vld [vmem:[#allocation40_spill] sm:$0xff]  ;;  %v4246_v49 = vld [vmem:[#allocation29_spill] sm:$0xff] }
 0x159   : > { %1056 = vmatprep.subr.bf16.mxu1 %v830_v14  ;;  %944 = vmatpush1.bf16.msra.mxu0 %v827_v36  ;;  %v758_v2 = vmax.f32 %v2830_v25, 0.0  ;;  %v759_v7 = vmax.f32 %v578_v15, 0.0  ;;  %v822_v28 = vpack.c.bf16 %v766_v63, %v762_v46  ;;  %v562_v30 = vadd.f32 %v2756_v21, %v2714_v4  ;;  %v4241_v14 = vld [vmem:[#allocation15_spill] sm:$0xff]  ;;  %v4243_v15 = vld [vmem:[#allocation12_spill] sm:$0xff]  ;;  %v4244_v63 = vld [vmem:[#allocation41_spill] sm:$0xff] }
 0x15a   : > { %1057 = vmatpush1.bf16.msra.mxu1 %v829_v52  ;;  %945 = vmatprep.subr.bf16.mxu0 %v824_v57  ;;  %v681_v32 = vadd.f32 %v2764_v35, %v2708_v1  ;;  %v752_v42 = vmax.f32 %v2819_v19, 0.0  ;;  %v761_v17 = vmax.f32 %v691_v38, 0.0  ;;  %v675_v0 = vadd.f32 %v2758_v27, %v2714_v4  ;;  %v4233_v35 = vld [vmem:[#allocation35_spill] sm:$0xff]  ;;  %v4245_v38 = vld [vmem:[#allocation22_spill] sm:$0xff] }
 0x15b   : > { %1058 = vmatprep.subr.bf16.mxu1 %v826_v59  ;;  %v754_v33 = vmax.f32 %v2822_v18, 0.0  ;;  %v755_v25 = vmax.f32 %v572_v44, 0.0  ;;  %v819_v11 = vpack.c.bf16 %v763_v6, %v759_v7  ;;  %v748_v21 = vmax.f32 %v2813_v9, 0.0  ;;  %v4235_v18 = vld [vmem:[#allocation23_spill] sm:$0xff]  ;;  %v4238_v9 = vld [vmem:[#allocation42_spill] sm:$0xff]  ;;  %1666 = vperm.xlu1 %2151, %v4241_v14  }
 0x15c   : > { %v757_v10 = vmax.f32 %v685_v31, 0.0  ;;  %v816_v8 = vpack.c.bf16 %v756_v20, %v752_v42  ;;  %v821_v1 = vpack.c.bf16 %v765_v26, %v761_v17  ;;  %v558_v19 = vadd.f32 %v4233_v35, %v2712_v3  ;;  %1678 = vperm.xlu0 %2152, %v4243_v15   ;;  %v4247_v31 = vld [vmem:[#allocation38_spill] sm:$0xff]  ;;  %v4251_v17 = vld [vmem:[#allocation20_spill] sm:$0xff] }
 0x15d   : > { %946 = vmatpush1.bf16.msra.mxu0 %v823_v47  ;;  %v750_v53 = vmax.f32 %v4234_v23, 0.0  ;;  %v751_v4 = vmax.f32 %v568_v37, 0.0  ;;  %v818_v27 = vpack.c.bf16 %v758_v2, %v754_v33  ;;  %v552_v29 = vadd.f32 %v4236_v54, %v4235_v18  ;;  %v4248_v47 = vld [vmem:[#allocation39_spill] sm:$0xff]  ;;  %v4257_v35 = vld [vmem:[#allocation28_spill] sm:$0xff]  ;;  %v4259_v23 = vld [vmem:[#allocation26_spill] sm:$0xff] }
 0x15e   : > { %1059 = vmatpush1.bf16.msra.mxu1 %v825_v56  ;;  %947 = vmatprep.subr.bf16.mxu0 %v820_v62  ;;  %v671_v16 = vadd.f32 %v4237_v51, %v2712_v3  ;;  %v744_v12 = vmax.f32 %v4238_v9, 0.0  ;;  %v753_v58 = vmax.f32 %v681_v32, 0.0  ;;  %v665_v40 = vadd.f32 %v4239_v55, %v4235_v18  ;;  %v4249_v56 = vld [vmem:[#allocation14_spill] sm:$0xff]  ;;  %v4262_v18 = vld [vmem:[#allocation24_spill] sm:$0xff]  ;;  %v4263_v54 = vld [vmem:[#allocation25_spill] sm:$0xff] }
 0x15f   : > { %1060 = vmatprep.subr.bf16.mxu1 %v822_v28  ;;  %v746_v5 = vmax.f32 %v4240_v61, 0.0  ;;  %v747_v60 = vmax.f32 %v562_v30, 0.0  ;;  %v815_v36 = vpack.c.bf16 %v755_v25, %v751_v4  ;;  %v740_v24 = vmax.f32 %v4242_v13, 0.0  ;;  %1674 = vperm.xlu1 %2151, %v4249_v56   ;;  %v4250_v30 = vld [vmem:[#allocation37_spill] sm:$0xff]  ;;  %v2163_v4 = vld [vmem:[%s4089_s2] sm:$0xff]   ;;  %v2170_v9 = vld [vmem:[%s4089_s2 + $0x38] sm:$0xff]  }
 0x160   : > { %v749_v57 = vmax.f32 %v675_v0, 0.0  ;;  %v812_v52 = vpack.c.bf16 %v748_v21, %v744_v12  ;;  %v817_v3 = vpack.c.bf16 %v757_v10, %v753_v58  ;;  %v742_v22 = vmax.f32 %v4244_v63, 0.0  ;;  %v4252_v25 = vld [vmem:[#allocation13_spill] sm:$0xff]  ;;  %v4253_v21 = vld [vmem:[#allocation19_spill] sm:$0xff]  ;;  %v4267_v13 = vld [vmem:[#allocation8_spill] sm:$0xff] }
 0x161   : > { %948 = vmatpush1.bf16.msra.mxu0 %v819_v11  ;;  %v743_v59 = vmax.f32 %v558_v19, 0.0  ;;  %v814_v44 = vpack.c.bf16 %v750_v53, %v746_v5  ;;  %v661_v50 = vadd.f32 %v4246_v49, %v4245_v38  ;;  %v736_v46 = vmax.f32 %v4247_v31, 0.0  ;;  %v4254_v10 = vld [vmem:[#allocation31_spill] sm:$0xff]  ;;  %v4258_v19 = vld [vmem:[#allocation30_spill] sm:$0xff]  ;;  %v2164_v51 = vld [vmem:[%s4089_s2 + $0x8] sm:$0xff]  }
 0x162   : > { %1061 = vmatpush1.bf16.msra.mxu1 %v821_v1  ;;  %949 = vmatprep.subr.bf16.mxu0 %v816_v8  ;;  %v745_v6 = vmax.f32 %v671_v16, 0.0  ;;  %v738_v20 = vmax.f32 %v4248_v47, 0.0  ;;  %v739_v26 = vmax.f32 %v552_v29, 0.0  ;;  %v741_v37 = vmax.f32 %v665_v40, 0.0  ;;  %v4255_v8 = vld [vmem:[#allocation32_spill] sm:$0xff]  ;;  %v4256_v1 = vld [vmem:[#allocation21_spill] sm:$0xff] }
 0x163   : > { %1062 = vmatprep.subr.bf16.mxu1 %v818_v27  ;;  %v811_v62 = vpack.c.bf16 %v747_v60, %v743_v59  ;;  %v808_v2 = vpack.c.bf16 %v740_v24, %v736_v46  ;;  %v2355_v28 = vmov 3   ;;  %v735_v32 = vmax.f32 %v4250_v30, 0.0  ;;  %1682 = vperm.xlu1 %2151, %v4252_v25   ;;  %v4260_v53 = vld [vmem:[#allocation27_spill] sm:$0xff]  ;;  %v4261_v27 = vld [vmem:[#allocation18_spill] sm:$0xff]  ;;  %v4266_v16 = vld [vmem:[#allocation16_spill] sm:$0xff] }
 0x164   : > { %v813_v7 = vpack.c.bf16 %v749_v57, %v745_v6  ;;  %2153 = vset.pattern.permute.xlu0 %v2355_v28  ;;  %v810_v42 = vpack.c.bf16 %v742_v22, %v738_v20  ;;  %v737_v0 = vmax.f32 %v661_v50, 0.0  ;;  %v4265_v29 = vmov 0   ;;  %v2179_v59 = vld [vmem:[%s2474_s9 + $0x8] sm:$0xff]  ;;  %v2180_v50 = vld [vmem:[%s2474_s9 + $0x18] sm:$0xff] }
 0x165   : > { %950 = vmatpush1.bf16.msra.mxu0 %v815_v36  ;;  %1750 = vperm.xlu0 %2153, %v4251_v17   ;;  %v807_v33 = vpack.c.bf16 %v739_v26, %v735_v32  ;;  %v4270_v47 = vld [vmem:[#allocation9_spill] sm:$0xff] }
 0x166   : > { %1063 = vmatpush1.bf16.msra.mxu1 %v817_v3  ;;  %951 = vmatprep.subr.bf16.mxu0 %v812_v52  ;;  %v809_v11 = vpack.c.bf16 %v741_v37, %v737_v0  ;;  %v4268_v3 = vld [vmem:[#allocation10_spill] sm:$0xff]  ;;  %v2181_v17 = vld [vmem:[%s2474_s9 + $0x28] sm:$0xff] }
 0x167   : > { %1064 = vmatprep.subr.bf16.mxu1 %v814_v44  ;;  %2154 = vset.pattern.permute.xlu1 %v2355_v28 }
 0x168   : > { %1754 = vperm.xlu1 %2154, %v4256_v1  }
 0x169   : > { %952 = vmatpush1.bf16.msra.mxu0 %v811_v62  ;;  %1762 = vperm.xlu0 %2153, %v4253_v21   ;;  %v2182_v21 = vld [vmem:[%s2474_s9 + $0x38] sm:$0xff] }
 0x16a   : > { %1065 = vmatpush1.bf16.msra.mxu1 %v813_v7  ;;  %953 = vmatprep.subr.bf16.mxu0 %v808_v2  ;;  %v4271_v2 = vld [vmem:[#allocation11_spill] sm:$0xff] }
 0x16b   : > { %1066 = vmatprep.subr.bf16.mxu1 %v810_v42 }
 0x16c   : > { %1758 = vperm.xlu1 %2154, %v4261_v27   ;;  %v2183_v27 = vld [vmem:[%s2474_s9 + $0x40] sm:$0xff] }
 0x16d   : > { %954 = vmatpush1.bf16.msra.mxu0 %v807_v33  ;;  %1770 = vperm.xlu0 %2153, %v2641_v48   ;;  %v4264_v48 = vld [vmem:[#allocation17_spill] sm:$0xff] }
 0x16e   : > { %1067 = vmatpush1.bf16.msra.mxu1 %v809_v11  ;;  %955 = vmatprep.subr.bf16.mxu0 %v4254_v10 }
 0x16f   : > { %1068 = vmatprep.subr.bf16.mxu1 %v4255_v8 }
 0x170   : > { %1766 = vperm.xlu1 %2154, %v4264_v48  }
 0x171   : > { %956 = vmatpush1.bf16.msra.mxu0 %v4257_v35  ;;  %1778 = vperm.xlu0 %2153, %v2624_v45   ;;  %v2169_v45 = vld [vmem:[%s4089_s2 + $0x30] sm:$0xff]  }
 0x172   : > { %1069 = vmatpush1.bf16.msra.mxu1 %v4258_v19  ;;  %957 = vmatprep.subr.bf16.mxu0 %v4259_v23 }
 0x173   : > { %1070 = vmatprep.subr.bf16.mxu1 %v4260_v53 }
 0x174   : > { %1774 = vperm.xlu1 %2154, %v4266_v16   ;;  %v2184_v16 = vld [vmem:[%s2474_s9 + $0x50] sm:$0xff] }
 0x175   : > { %958 = vmatpush1.bf16.msra.mxu0 %v4262_v18  ;;  %1786 = vperm.xlu0 %2153, %v2611_v43   ;;  %v2165_v43 = vld [vmem:[%s4089_s2 + $0x10] sm:$0xff]  }
 0x176   : > { %1071 = vmatpush1.bf16.msra.mxu1 %v4263_v54 }
 0x178   : > { %976 = vmatmul.mubr.bf16.vlgmr.msra.gmra.mxu0 %v2163_v4  ;;  %1782 = vperm.xlu1 %2154, %v2601_v41   ;;  %v2166_v41 = vld [vmem:[%s4089_s2 + $0x18] sm:$0xff]  }
 0x179   : > { %1089 = vmatmul.mubr.bf16.vlgmr.msra.gmra.mxu1 %v2163_v4  ;;  %985 = vmatprep.mubr.bf16.mxu0 %v4265_v29 }
 0x17a   : > { %1098 = vmatprep.mubr.bf16.mxu1 %v4265_v29  ;;  %1794 = vperm.xlu0 %2153, %v4241_v14  }
 0x17c   : > { %1790 = vperm.xlu1 %2154, %v2590_v39   ;;  %v2168_v39 = vld [vmem:[%s4089_s2 + $0x28] sm:$0xff]  }
 0x17e   : > { %1802 = vperm.xlu0 %2153, %v4249_v56  }
 0x180   : > { %986 = vmatmul.mubr.bf16.gmra.mxu0 %v2164_v51  ;;  %1798 = vperm.xlu1 %2154, %v2567_v34   ;;  %v2167_v34 = vld [vmem:[%s4089_s2 + $0x20] sm:$0xff]  }
 0x181   : > { %1099 = vmatmul.mubr.bf16.gmra.mxu1 %v2164_v51  ;;  %995 = vmatprep.mubr.bf16.mxu0 %v4265_v29 }
 0x182   : > { %1108 = vmatprep.mubr.bf16.mxu1 %v4265_v29  ;;  %1810 = vperm.xlu0 %2153, %v4252_v25  }
 0x184   : > { %1806 = vperm.xlu1 %2154, %v4243_v15  }
 0x188   : > { %996 = vmatmul.mubr.bf16.gmra.mxu0 %v2165_v43 }
 0x189   : > { %1109 = vmatmul.mubr.bf16.gmra.mxu1 %v2165_v43  ;;  %1005 = vmatprep.mubr.bf16.mxu0 %v4265_v29 }
 0x18a   : > { %1118 = vmatprep.mubr.bf16.mxu1 %v4265_v29 }
 0x190   : > { %1006 = vmatmul.mubr.bf16.gmra.mxu0 %v2166_v41 }
 0x191   : > { %1119 = vmatmul.mubr.bf16.gmra.mxu1 %v2166_v41  ;;  %1015 = vmatprep.mubr.bf16.mxu0 %v4265_v29 }
 0x192   : > { %1128 = vmatprep.mubr.bf16.mxu1 %v4265_v29 }
 0x198   : > { %1016 = vmatmul.mubr.bf16.gmra.mxu0 %v2167_v34 }
 0x199   : > { %1129 = vmatmul.mubr.bf16.gmra.mxu1 %v2167_v34  ;;  %1025 = vmatprep.mubr.bf16.mxu0 %v4265_v29 }
 0x19a   : > { %1138 = vmatprep.mubr.bf16.mxu1 %v4265_v29 }
 0x19d   : > { %v833_v58 = vpop.permute.xlu0 %832  ;;  %v837_v5 = vpop.permute.xlu1 %836 }
 0x1a0   : > { %1026 = vmatmul.mubr.bf16.gmra.mxu0 %v2168_v39 }
 0x1a1   : > { %1139 = vmatmul.mubr.bf16.gmra.mxu1 %v2168_v39  ;;  %1035 = vmatprep.mubr.bf16.mxu0 %v4265_v29  ;;  %v841_v28 = vpop.permute.xlu1 %840  ;;  %v2185_v39 = vld [vmem:[%s2474_s9 + $0x48] sm:$0xff] }
 0x1a2   : > { %1148 = vmatprep.mubr.bf16.mxu1 %v4265_v29 }
 0x1a8   : > { %1036 = vmatmul.mubr.bf16.gmra.mxu0 %v2169_v45 }
 0x1a9   : > { %1149 = vmatmul.mubr.bf16.gmra.mxu1 %v2169_v45  ;;  %1045 = vmatprep.mubr.bf16.mxu0 %v4265_v29 }
 0x1aa   : > { %1158 = vmatprep.mubr.bf16.mxu1 %v4265_v29 }
 0x1b0   : > { %1046 = vmatmul.mubr.bf16.gmra.mxu0 %v2170_v9 }
 0x1b1   : > { %1159 = vmatmul.mubr.bf16.gmra.mxu1 %v2170_v9 }
 0x238   : > { %v977_v12 = vpop.f32.mrf.mxu0 }
 0x239   : > { %v1090_v55 = vpop.f32.mrf.mxu1  ;;  %v978_v40 = vadd.f32 %v977_v12, %v833_v58 }
 0x23a   : > { %v979_v61 = vpop.f32.mrf.mxu0  ;;  %v1091_v60 = vadd.f32 %v1090_v55, %v833_v58  ;;  %v2186_v55 = vld [vmem:[%s2474_s9 + $0x58] sm:$0xff] }
 0x23b   : > { %v1092_v36 = vpop.f32.mrf.mxu1  ;;  %v980_v14 = vadd.f32 %v979_v61, %v833_v58  ;;  %v2987_v24 = vadd.f32 %v978_v40, %v4267_v13 }
 0x23c   : > { %v981_v57 = vpop.f32.mrf.mxu0  ;;  %v1093_v52 = vadd.f32 %v1092_v36, %v833_v58  ;;  %v2990_v15 = vadd.f32 %v1091_v60, %v4268_v3 }
 0x23d   : > { %v1094_v63 = vpop.f32.mrf.mxu1  ;;  %v982_v22 = vadd.f32 %v981_v57, %v837_v5  ;;  %v2993_v44 = vadd.f32 %v2179_v59, %v980_v14  ;;  %v1321_v26 = vmul.f32 %v2987_v24, %v2987_v24  ;;  %v845_v14 = vpop.permute.xlu0 %844 }
 0x23e   : > { %v983_v38 = vpop.f32.mrf.mxu0  ;;  %v1095_v49 = vadd.f32 %v1094_v63, %v837_v5  ;;  %v2996_v31 = vadd.f32 %v2180_v50, %v1093_v52  ;;  %v1323_v62 = vmul.f32 %v2990_v15, %v2990_v15 }
 0x23f   : > { %v1096_v46 = vpop.f32.mrf.mxu1  ;;  %v984_v6 = vadd.f32 %v983_v38, %v837_v5  ;;  %v2999_v20 = vadd.f32 %v982_v22, %v4270_v47  ;;  %v1322_v30 = vmul.f32 %v2993_v44, %v2993_v44  ;;  %v849_v38 = vpop.permute.xlu1 %848 }
 0x240   : > { %4269 = vst [vmem:[#allocation35_spill] sm:$0xff] %v2996_v31  ;;  %v987_v56 = vpop.f32.mrf.mxu0  ;;  %v1097_v37 = vadd.f32 %v1096_v46, %v837_v5  ;;  %v3006_v7 = vadd.f32 %v1095_v49, %v4271_v2  ;;  %v1324_v32 = vmul.f32 %v2996_v31, %v2996_v31  ;;  %v2189_v2 = vld [vmem:[%s2474_s9 + $0x70] sm:$0xff] }
 0x241   : > { %v1100_v42 = vpop.f32.mrf.mxu1  ;;  %v3013_v0 = vadd.f32 %v2181_v17, %v984_v6  ;;  %v1325_v33 = vmul.f32 %v2999_v20, %v2999_v20  ;;  %v988_v25 = vadd.f32 %v987_v56, %v841_v28  ;;  %v1233_v11 = vadd.f32 %v2999_v20, %v2987_v24  ;;  %v2188_v56 = vld [vmem:[%s2474_s9 + $0x68] sm:$0xff] }
 0x242   : > { %v3020_v10 = vadd.f32 %v2182_v21, %v1097_v37  ;;  %v1327_v8 = vmul.f32 %v3006_v7, %v3006_v7  ;;  %v989_v1 = vpop.f32.mrf.mxu0  ;;  %v1101_v35 = vadd.f32 %v1100_v42, %v841_v28  ;;  %v1275_v19 = vadd.f32 %v3006_v7, %v2990_v15  ;;  %v2190_v42 = vld [vmem:[%s2474_s9 + $0x78] sm:$0xff] }
 0x243   : > { %v1326_v23 = vmul.f32 %v3013_v0, %v3013_v0  ;;  %v1102_v53 = vpop.f32.mrf.mxu1  ;;  %v990_v4 = vadd.f32 %v989_v1, %v841_v28  ;;  %v3029_v18 = vadd.f32 %v2183_v27, %v988_v25  ;;  %v1254_v54 = vadd.f32 %v3013_v0, %v2993_v44 }
 0x244   : > { %v1328_v48 = vmul.f32 %v3020_v10, %v3020_v10  ;;  %v991_v29 = vpop.f32.mrf.mxu0  ;;  %v1103_v51 = vadd.f32 %v1102_v53, %v841_v28  ;;  %v3036_v43 = vadd.f32 %v2184_v16, %v1101_v35  ;;  %v1296_v41 = vadd.f32 %v3020_v10, %v2996_v31  ;;  %v2192_v53 = vld [vmem:[%s2474_s9 + $0x90] sm:$0xff] }
 0x245   : > { %4272 = vst [vmem:[#allocation44_spill] sm:$0xff] %v3029_v18  ;;  %v1104_v34 = vpop.f32.mrf.mxu1  ;;  %v3041_v45 = vadd.f32 %v2185_v39, %v990_v4  ;;  %v1329_v9 = vmul.f32 %v3029_v18, %v3029_v18  ;;  %v1385_v12 = vadd.f32 %v1325_v33, %v1321_v26  ;;  %v1406_v58 = vadd.f32 %v1326_v23, %v1322_v30  ;;  %v2187_v26 = vld [vmem:[%s2474_s9 + $0x60] sm:$0xff] }
 0x246   : > { %4273 = vst [vmem:[#allocation23_spill] sm:$0xff] %v3036_v43  ;;  %v3046_v40 = vadd.f32 %v2186_v55, %v1103_v51  ;;  %v1331_v61 = vmul.f32 %v3036_v43, %v3036_v43  ;;  %v993_v5 = vpop.f32.mrf.mxu0  ;;  %v1427_v60 = vadd.f32 %v1327_v8, %v1323_v62  ;;  %v1448_v36 = vadd.f32 %v1328_v48, %v1324_v32  ;;  %v2193_v51 = vld [vmem:[%s2474_s9 + $0x88] sm:$0xff] }
 0x247   : > { %4274 = vst [vmem:[#allocation33_spill] sm:$0xff] %v3041_v45  ;;  %v1330_v13 = vmul.f32 %v3041_v45, %v3041_v45  ;;  %v1106_v57 = vpop.f32.mrf.mxu1  ;;  %v992_v52 = vadd.f32 %v991_v29, %v845_v14  ;;  %v994_v3 = vadd.f32 %v993_v5, %v845_v14  ;;  %v1105_v63 = vadd.f32 %v1104_v34, %v845_v14  ;;  %v2194_v5 = vld [vmem:[%s2474_s9 + $0x98] sm:$0xff] }
 0x248   : > { %4275 = vst [vmem:[#allocation36_spill] sm:$0xff] %v3046_v40  ;;  %v1332_v22 = vmul.f32 %v3046_v40, %v3046_v40  ;;  %v997_v59 = vpop.f32.mrf.mxu0  ;;  %v1107_v49 = vadd.f32 %v1106_v57, %v845_v14  ;;  %v1234_v50 = vadd.f32 %v1233_v11, %v3029_v18  ;;  %v1255_v46 = vadd.f32 %v1254_v54, %v3041_v45  ;;  %v2191_v11 = vld [vmem:[%s2474_s9 + $0x80] sm:$0xff] }
 0x249   : > { %v1110_v6 = vpop.f32.mrf.mxu1  ;;  %v998_v47 = vadd.f32 %v997_v59, %v849_v38  ;;  %v3057_v62 = vadd.f32 %v2187_v26, %v992_v52  ;;  %v3060_v37 = vadd.f32 %v2188_v56, %v994_v3  ;;  %v3063_v28 = vadd.f32 %v2189_v2, %v1105_v63 }
 0x24a   : > { %v1111_v30 = vadd.f32 %v1110_v6, %v849_v38  ;;  %v999_v32 = vpop.f32.mrf.mxu0  ;;  %v3066_v17 = vadd.f32 %v2190_v42, %v1107_v49  ;;  %v1276_v33 = vadd.f32 %v1275_v19, %v3036_v43  ;;  %v1297_v25 = vadd.f32 %v1296_v41, %v3046_v40 }
 0x24b   : > { %4276 = vst [vmem:[#allocation42_spill] sm:$0xff] %v3057_v62  ;;  %4277 = vst [vmem:[#allocation34_spill] sm:$0xff] %v3060_v37  ;;  %v3071_v21 = vadd.f32 %v2191_v11, %v998_v47  ;;  %v1000_v8 = vadd.f32 %v999_v32, %v849_v38  ;;  %v1112_v1 = vpop.f32.mrf.mxu1  ;;  %v1235_v35 = vadd.f32 %v1234_v50, %v3057_v62  ;;  %v857_v47 = vpop.permute.xlu1 %856  ;;  %v2195_v11 = vld [vmem:[%s2474_s9 + $0xc0] sm:$0xff] }
 0x24c   : > { %4278 = vst [vmem:[#allocation43_spill] sm:$0xff] %v3063_v28  ;;  %4279 = vst [vmem:[#allocation15_spill] sm:$0xff] %v3066_v17  ;;  %v3075_v23 = vadd.f32 %v1255_v46, %v3060_v37  ;;  %v3078_v4 = vadd.f32 %v2192_v53, %v1111_v30  ;;  %v1113_v27 = vadd.f32 %v1112_v1, %v849_v38  ;;  %v1001_v54 = vpop.f32.mrf.mxu0  ;;  %v853_v46 = vpop.permute.xlu0 %852  ;;  %v2197_v1 = vld [vmem:[%s2474_s9 + $0xa8] sm:$0xff] }
 0x24d   : > { %4280 = vst [vmem:[#allocation40_spill] sm:$0xff] %v3071_v21  ;;  %v1277_v19 = vadd.f32 %v1276_v33, %v3063_v28  ;;  %v3082_v48 = vadd.f32 %v1297_v25, %v3066_v17  ;;  %v1337_v29 = vmul.f32 %v3071_v21, %v3071_v21  ;;  %v3087_v16 = vadd.f32 %v2193_v51, %v1000_v8  ;;  %v1114_v41 = vpop.f32.mrf.mxu1  ;;  %v2198_v51 = vld [vmem:[%s2474_s9 + $0xd0] sm:$0xff] }
 0x24e   : > { %4281 = vst [vmem:[#allocation12_spill] sm:$0xff] %v3078_v4  ;;  %v1333_v34 = vmul.f32 %v3057_v62, %v3057_v62  ;;  %v1334_v39 = vmul.f32 %v3060_v37, %v3060_v37  ;;  %v1339_v55 = vmul.f32 %v3078_v4, %v3078_v4  ;;  %v3096_v14 = vadd.f32 %v2194_v5, %v1113_v27  ;;  %v1003_v3 = vpop.f32.mrf.mxu0 }
 0x24f   : > { %4282 = vst [vmem:[#allocation41_spill] sm:$0xff] %v3087_v16  ;;  %v1335_v57 = vmul.f32 %v3063_v28, %v3063_v28  ;;  %v1336_v52 = vmul.f32 %v3066_v17, %v3066_v17  ;;  %v1338_v63 = vmul.f32 %v3087_v16, %v3087_v16  ;;  %v1386_v59 = vadd.f32 %v1385_v12, %v1329_v9  ;;  %v1116_v50 = vpop.f32.mrf.mxu1 }
 0x250   : > { %4283 = vst [vmem:[#allocation22_spill] sm:$0xff] %v3096_v14  ;;  %v1407_v38 = vadd.f32 %v1406_v58, %v1330_v13  ;;  %v1428_v49 = vadd.f32 %v1427_v60, %v1331_v61  ;;  %v1340_v6 = vmul.f32 %v3096_v14, %v3096_v14  ;;  %v1449_v26 = vadd.f32 %v1448_v36, %v1332_v22  ;;  %v1007_v56 = vpop.f32.mrf.mxu0  ;;  %v2196_v22 = vld [vmem:[%s2474_s9 + $0xa0] sm:$0xff] }
 0x251   : > { %v1002_v2 = vadd.f32 %v1001_v54, %v853_v46  ;;  %v1004_v30 = vadd.f32 %v1003_v3, %v853_v46  ;;  %v1387_v32 = vadd.f32 %v1386_v59, %v1333_v34  ;;  %v1008_v9 = vadd.f32 %v1007_v56, %v857_v47  ;;  %v1120_v12 = vpop.f32.mrf.mxu1 }
 0x252   : > { %v1408_v42 = vadd.f32 %v1407_v38, %v1334_v39  ;;  %v1429_v33 = vadd.f32 %v1428_v49, %v1335_v57  ;;  %v1450_v58 = vadd.f32 %v1449_v26, %v1336_v52  ;;  %v1121_v61 = vadd.f32 %v1120_v12, %v857_v47  ;;  %v1009_v25 = vpop.f32.mrf.mxu0  ;;  %v2199_v39 = vld [vmem:[%s2474_s9 + $0xb0] sm:$0xff] }
 0x253   : > { %v1115_v60 = vadd.f32 %v1114_v41, %v853_v46  ;;  %v1117_v13 = vadd.f32 %v1116_v50, %v853_v46  ;;  %v3107_v36 = vadd.f32 %v2195_v11, %v1008_v9  ;;  %v3110_v8 = vadd.f32 %v2196_v22, %v1002_v2  ;;  %v1122_v54 = vpop.f32.mrf.mxu1  ;;  %v2200_v41 = vld [vmem:[%s2474_s9 + $0xb8] sm:$0xff] }
 0x254   : > { %v3113_v53 = vadd.f32 %v2197_v1, %v1004_v30  ;;  %v1236_v27 = vadd.f32 %v1235_v35, %v3071_v21  ;;  %v3117_v34 = vadd.f32 %v2198_v51, %v1121_v61  ;;  %v1278_v52 = vadd.f32 %v1277_v19, %v3078_v4  ;;  %v1011_v3 = vpop.f32.mrf.mxu0  ;;  %v2229_v21 = vld [vmem:[%s2474_s9 + $0x1a8] sm:$0xff] }
 0x255   : > { %4284 = vst [vmem:[#allocation29_spill] sm:$0xff] %v3107_v36  ;;  %4285 = vst [vmem:[#allocation38_spill] sm:$0xff] %v3110_v8  ;;  %v3120_v5 = vadd.f32 %v2199_v39, %v1115_v60  ;;  %v3123_v57 = vadd.f32 %v2200_v41, %v1117_v13  ;;  %v1345_v59 = vmul.f32 %v3107_v36, %v3107_v36  ;;  %v1124_v50 = vpop.f32.mrf.mxu1  ;;  %v2201_v41 = vld [vmem:[%s2474_s9 + $0xc8] sm:$0xff] }
 0x256   : > { %4286 = vst [vmem:[#allocation39_spill] sm:$0xff] %v3113_v53  ;;  %4287 = vst [vmem:[#allocation14_spill] sm:$0xff] %v3117_v34  ;;  %v1237_v38 = vadd.f32 %v1236_v27, %v3110_v8  ;;  %v1341_v35 = vmul.f32 %v3110_v8, %v3110_v8  ;;  %v1342_v49 = vmul.f32 %v3113_v53, %v3113_v53  ;;  %v1013_v2 = vpop.f32.mrf.mxu0  ;;  %v2221_v8 = vld [vmem:[%s2474_s9 + $0x168] sm:$0xff] }
 0x257   : > { %4288 = vst [vmem:[#allocation37_spill] sm:$0xff] %v3120_v5  ;;  %4289 = vst [vmem:[#allocation20_spill] sm:$0xff] %v3123_v57  ;;  %v3135_v46 = vmul.f32 %v3117_v34, %v3117_v34  ;;  %v3138_v26 = vadd.f32 %v1278_v52, %v3120_v5  ;;  %v1343_v19 = vmul.f32 %v3120_v5, %v3120_v5  ;;  %v1126_v60 = vpop.f32.mrf.mxu1 }
 0x258   : > { %v1344_v56 = vmul.f32 %v3123_v57, %v3123_v57  ;;  %v1388_v30 = vadd.f32 %v1387_v32, %v1337_v29  ;;  %v1430_v9 = vadd.f32 %v1429_v33, %v1339_v55  ;;  %v1010_v12 = vadd.f32 %v1009_v25, %v857_v47  ;;  %v1017_v27 = vpop.f32.mrf.mxu0  ;;  %v2202_v33 = vld [vmem:[%s2474_s9 + $0xd8] sm:$0xff] }
 0x259   : > { %v1257_v61 = vadd.f32 %v3075_v23, %v3087_v16  ;;  %v1409_v13 = vadd.f32 %v1408_v42, %v1338_v63  ;;  %v1123_v11 = vadd.f32 %v1122_v54, %v857_v47  ;;  %v1299_v22 = vadd.f32 %v3082_v48, %v3096_v14  ;;  %v1130_v55 = vpop.f32.mrf.mxu1  ;;  %v861_v47 = vpop.permute.xlu0 %860  ;;  %v2223_v14 = vld [vmem:[%s2474_s9 + $0x180] sm:$0xff] }
 0x25a   : > { %v1451_v1 = vadd.f32 %v1450_v58, %v1340_v6  ;;  %v1389_v51 = vadd.f32 %v1388_v30, %v1341_v35  ;;  %v1431_v39 = vadd.f32 %v1430_v9, %v1343_v19  ;;  %v3149_v52 = vadd.f32 %v2201_v41, %v1010_v12  ;;  %v1019_v48 = vpop.f32.mrf.mxu0 }
 0x25b   : > { %v1258_v29 = vadd.f32 %v1257_v61, %v3113_v53  ;;  %v1410_v32 = vadd.f32 %v1409_v13, %v1342_v49  ;;  %v3153_v25 = vadd.f32 %v2202_v33, %v1123_v11  ;;  %v1300_v23 = vadd.f32 %v1299_v22, %v3123_v57  ;;  %v1132_v35 = vpop.f32.mrf.mxu1  ;;  %v865_v49 = vpop.permute.xlu1 %864  ;;  %v2203_v13 = vld [vmem:[%s2474_s9 + $0xe0] sm:$0xff]  ;;  %v2204_v22 = vld [vmem:[%s2474_s9 + $0xf0] sm:$0xff] }
 0x25c   : > { %4290 = vst [vmem:[#allocation13_spill] sm:$0xff] %v3149_v52  ;;  %v1452_v63 = vadd.f32 %v1451_v1, %v1344_v56  ;;  %v1346_v42 = vmul.f32 %v3149_v52, %v3149_v52  ;;  %v1012_v58 = vadd.f32 %v1011_v3, %v861_v47  ;;  %v1125_v54 = vadd.f32 %v1124_v50, %v861_v47  ;;  %v1021_v12 = vpop.f32.mrf.mxu0 }
 0x25d   : > { %4291 = vst [vmem:[#allocation19_spill] sm:$0xff] %v3153_v25  ;;  %v1259_v6 = vadd.f32 %v1258_v29, %v3149_v52  ;;  %v1301_v19 = vadd.f32 %v1300_v23, %v3153_v25  ;;  %v1348_v30 = vmul.f32 %v3153_v25, %v3153_v25  ;;  %v1014_v56 = vadd.f32 %v1013_v2, %v861_v47  ;;  %v1134_v1 = vpop.f32.mrf.mxu1  ;;  %v2205_v29 = vld [vmem:[%s2474_s9 + $0xe8] sm:$0xff]  ;;  %v2206_v23 = vld [vmem:[%s2474_s9 + $0xf8] sm:$0xff]  ;;  %v2208_v25 = vld [vmem:[%s2474_s9 + $0x110] sm:$0xff] }
 0x25e   : > { %v1127_v9 = vadd.f32 %v1126_v60, %v861_v47  ;;  %v1411_v61 = vadd.f32 %v1410_v32, %v1346_v42  ;;  %v3163_v11 = vadd.f32 %v2203_v13, %v1012_v58  ;;  %v3166_v3 = vadd.f32 %v2204_v22, %v1125_v54  ;;  %v1023_v60 = vpop.f32.mrf.mxu0  ;;  %v2207_v42 = vld [vmem:[%s2474_s9 + $0x100] sm:$0xff] }
 0x25f   : > { %v1018_v50 = vadd.f32 %v1017_v27, %v865_v49  ;;  %v1453_v41 = vadd.f32 %v1452_v63, %v1348_v30  ;;  %v3169_v33 = vadd.f32 %v2205_v29, %v1014_v56  ;;  %v1238_v2 = vadd.f32 %v1237_v38, %v3107_v36  ;;  %v1136_v63 = vpop.f32.mrf.mxu1 }
 0x260   : > { %4292 = vst [vmem:[#allocation31_spill] sm:$0xff] %v3163_v11  ;;  %4293 = vst [vmem:[#allocation32_spill] sm:$0xff] %v3166_v3  ;;  %v3172_v52 = vadd.f32 %v2206_v23, %v1127_v9  ;;  %v1349_v32 = vmul.f32 %v3163_v11, %v3163_v11  ;;  %v1351_v47 = vmul.f32 %v3166_v3, %v3166_v3  ;;  %v1027_v9 = vpop.f32.mrf.mxu0 }
 0x261   : > { %4294 = vst [vmem:[#allocation21_spill] sm:$0xff] %v3169_v33  ;;  %v3180_v58 = vadd.f32 %v2207_v42, %v1018_v50  ;;  %v1390_v27 = vadd.f32 %v1389_v51, %v1345_v59  ;;  %v1260_v54 = vadd.f32 %v1259_v6, %v3169_v33  ;;  %v1350_v30 = vmul.f32 %v3169_v33, %v3169_v33  ;;  %v1140_v51 = vpop.f32.mrf.mxu1 }
 0x262   : > { %4295 = vst [vmem:[#allocation28_spill] sm:$0xff] %v3172_v52  ;;  %v1302_v38 = vadd.f32 %v1301_v19, %v3172_v52  ;;  %v1352_v56 = vmul.f32 %v3172_v52, %v3172_v52  ;;  %v1239_v13 = vadd.f32 %v1238_v2, %v3163_v11  ;;  %v1131_v59 = vadd.f32 %v1130_v55, %v865_v49  ;;  %v1029_v42 = vpop.f32.mrf.mxu0  ;;  %v869_v11 = vpop.permute.xlu0 %868 }
 0x263   : > { %v1353_v22 = vmul.f32 %v3180_v58, %v3180_v58  ;;  %v1391_v50 = vadd.f32 %v1390_v27, %v1349_v32  ;;  %v1412_v29 = vadd.f32 %v1411_v61, %v1350_v30  ;;  %v1280_v23 = vadd.f32 %v3138_v26, %v3117_v34  ;;  %v1142_v55 = vpop.f32.mrf.mxu1 }
 0x264   : > { %v1454_v6 = vadd.f32 %v1453_v41, %v1352_v56  ;;  %v1432_v19 = vadd.f32 %v1431_v39, %v3135_v46  ;;  %v1240_v52 = vadd.f32 %v1239_v13, %v3180_v58  ;;  %v3196_v2 = vadd.f32 %v2208_v25, %v1131_v59  ;;  %v1031_v30 = vpop.f32.mrf.mxu0  ;;  %v2209_v39 = vld [vmem:[%s2474_s9 + $0x108] sm:$0xff] }
 0x265   : > { %v1392_v33 = vadd.f32 %v1391_v50, %v1353_v22  ;;  %v1020_v32 = vadd.f32 %v1019_v48, %v865_v49  ;;  %v1281_v61 = vadd.f32 %v1280_v23, %v3166_v3  ;;  %v1133_v27 = vadd.f32 %v1132_v35, %v865_v49  ;;  %v3204_v22 = vpop.f32.mrf.mxu1  ;;  %v2210_v50 = vld [vmem:[%s2474_s9 + $0x118] sm:$0xff] }
 0x266   : > { %v1433_v41 = vadd.f32 %v1432_v19, %v1351_v47  ;;  %v1022_v26 = vadd.f32 %v1021_v12, %v869_v11  ;;  %v1355_v46 = vmul.f32 %v3196_v2, %v3196_v2  ;;  %v1135_v25 = vadd.f32 %v1134_v1, %v869_v11  ;;  %v2211_v47 = vld [vmem:[%s2474_s9 + $0x120] sm:$0xff]  ;;  %v3213_v12 = vpop.f32.mrf.mxu0 }
 0x267   : > { %v3202_v56 = vadd.f32 %v2209_v39, %v1020_v32  ;;  %v1024_v13 = vadd.f32 %v1023_v60, %v869_v11  ;;  %v1282_v48 = vadd.f32 %v1281_v61, %v3196_v2  ;;  %v3208_v59 = vadd.f32 %v2210_v50, %v1133_v27  ;;  %v2212_v60 = vld [vmem:[%s2474_s9 + $0x130] sm:$0xff]  ;;  %v3221_v61 = vpop.f32.mrf.mxu1  ;;  %v873_v27 = vpop.permute.xlu1 %872  ;;  %v2213_v50 = vld [vmem:[%s2474_s9 + $0x128] sm:$0xff] }
 0x268   : > { %v3211_v35 = vadd.f32 %v2211_v47, %v1022_v26  ;;  %v1137_v49 = vadd.f32 %v1136_v63, %v869_v11  ;;  %v1434_v23 = vadd.f32 %v1433_v41, %v1355_v46  ;;  %v3219_v32 = vadd.f32 %v2212_v60, %v1135_v25  ;;  %v1037_v41 = vpop.f32.mrf.mxu0 }
 0x269   : > { %4296 = vst [vmem:[#allocation30_spill] sm:$0xff] %v3202_v56  ;;  %4297 = vst [vmem:[#allocation26_spill] sm:$0xff] %v3208_v59  ;;  %v1261_v19 = vadd.f32 %v1260_v54, %v3202_v56  ;;  %v1354_v1 = vmul.f32 %v3202_v56, %v3202_v56  ;;  %v1303_v26 = vadd.f32 %v1302_v38, %v3208_v59  ;;  %v1150_v38 = vpop.f32.mrf.mxu1 }
 0x26a   : > { %v1356_v11 = vmul.f32 %v3208_v59, %v3208_v59  ;;  %v1241_v63 = vadd.f32 %v1240_v52, %v3211_v35  ;;  %v1357_v54 = vmul.f32 %v3211_v35, %v3211_v35  ;;  %v1283_v39 = vadd.f32 %v1282_v48, %v3219_v32  ;;  %v2214_v59 = vld [vmem:[%s2474_s9 + $0x138] sm:$0xff]  ;;  %v1039_v34 = vpop.f32.mrf.mxu0 }
 0x26b   : > { %v1413_v46 = vadd.f32 %v1412_v29, %v1354_v1  ;;  %v1359_v25 = vmul.f32 %v3219_v32, %v3219_v32  ;;  %v3233_v47 = vadd.f32 %v2213_v50, %v1024_v13  ;;  %v3236_v52 = vadd.f32 %v2214_v59, %v1137_v49  ;;  %v1152_v57 = vpop.f32.mrf.mxu1  ;;  %v877_v13 = vpop.permute.xlu0 %876 }
 0x26c   : > { %v1455_v60 = vadd.f32 %v1454_v6, %v1356_v11  ;;  %v1393_v56 = vadd.f32 %v1392_v33, %v1357_v54  ;;  %v1028_v3 = vadd.f32 %v1027_v9, %v873_v27  ;;  %v1141_v1 = vadd.f32 %v1140_v51, %v873_v27  ;;  %v2215_v6 = vld [vmem:[%s2474_s9 + $0x140] sm:$0xff]  ;;  %v3250_v54 = vpop.f32.mrf.mxu0 }
 0x26d   : > { %4298 = vst [vmem:[#allocation27_spill] sm:$0xff] %v3233_v47  ;;  %4299 = vst [vmem:[#allocation18_spill] sm:$0xff] %v3236_v52  ;;  %v1435_v36 = vadd.f32 %v1434_v23, %v1359_v25  ;;  %v1262_v29 = vadd.f32 %v1261_v19, %v3233_v47  ;;  %v1358_v48 = vmul.f32 %v3233_v47, %v3233_v47  ;;  %v2216_v23 = vld [vmem:[%s2474_s9 + $0x150] sm:$0xff]  ;;  %v881_v25 = vpop.permute.xlu1 %880 }
 0x26e   : > { %v1304_v50 = vadd.f32 %v1303_v26, %v3236_v52  ;;  %v1360_v33 = vmul.f32 %v3236_v52, %v3236_v52  ;;  %v3245_v59 = vadd.f32 %v2215_v6, %v1028_v3  ;;  %v1030_v9 = vadd.f32 %v1029_v42, %v873_v27  ;;  %v2217_v3 = vld [vmem:[%s2474_s9 + $0x148] sm:$0xff]  ;;  %v3258_v42 = vpop.f32.mrf.mxu1 }
 0x26f   : > { %v1414_v49 = vadd.f32 %v1413_v46, %v1358_v48  ;;  %v3248_v19 = vadd.f32 %v2216_v23, %v1141_v1  ;;  %v1143_v11 = vadd.f32 %v1142_v55, %v873_v27  ;;  %v1032_v51 = vadd.f32 %v1031_v30, %v877_v13  ;;  %v2218_v30 = vld [vmem:[%s2474_s9 + $0x158] sm:$0xff] }
 0x270   : > { %v1456_v47 = vadd.f32 %v1455_v60, %v1360_v33  ;;  %v1242_v26 = vadd.f32 %v1241_v63, %v3245_v59  ;;  %v1361_v52 = vmul.f32 %v3245_v59, %v3245_v59  ;;  %v3256_v6 = vadd.f32 %v2217_v3, %v1030_v9  ;;  %v2219_v60 = vld [vmem:[%s2474_s9 + $0x160] sm:$0xff] }
 0x271   : > { %v1284_v46 = vadd.f32 %v1283_v39, %v3248_v19  ;;  %v1363_v55 = vmul.f32 %v3248_v19, %v3248_v19  ;;  %v3264_v27 = vadd.f32 %v2218_v30, %v1143_v11  ;;  %v3267_v48 = vadd.f32 %v2219_v60, %v1032_v51  ;;  %v1043_v30 = vpop.f32.mrf.mxu0  ;;  %v3284_v5 = vpop.permute.xlu1 %888 }
 0x272   : > { %v1394_v63 = vadd.f32 %v1393_v56, %v1361_v52  ;;  %v1263_v1 = vadd.f32 %v1262_v29, %v3256_v6  ;;  %v1362_v33 = vmul.f32 %v3256_v6, %v3256_v6  ;;  %v1145_v9 = vadd.f32 %v3204_v22, %v877_v13  ;;  %v2220_v52 = vld [vmem:[%s2474_s9 + $0x170] sm:$0xff]  ;;  %v1156_v22 = vpop.f32.mrf.mxu1 }
 0x273   : > { %v1436_v23 = vadd.f32 %v1435_v36, %v1363_v55  ;;  %v1305_v39 = vadd.f32 %v1304_v50, %v3264_v27  ;;  %v1364_v3 = vmul.f32 %v3264_v27, %v3264_v27  ;;  %v1243_v11 = vadd.f32 %v1242_v26, %v3267_v48 }
 0x274   : > { %v1415_v51 = vadd.f32 %v1414_v49, %v1362_v33  ;;  %v1365_v56 = vmul.f32 %v3267_v48, %v3267_v48  ;;  %v3280_v29 = vadd.f32 %v2220_v52, %v1145_v9  ;;  %v1034_v36 = vadd.f32 %v3213_v12, %v877_v13  ;;  %v2222_v52 = vld [vmem:[%s2474_s9 + $0x178] sm:$0xff] }
 0x275   : > { %v1457_v50 = vadd.f32 %v1456_v47, %v1364_v3  ;;  %v1147_v55 = vadd.f32 %v3221_v61, %v877_v13  ;;  %v1038_v60 = vadd.f32 %v1037_v41, %v881_v25  ;;  %v1151_v26 = vadd.f32 %v1150_v38, %v881_v25  ;;  %v2224_v61 = vld [vmem:[%s2474_s9 + $0x190] sm:$0xff]  ;;  %v1047_v13 = vpop.f32.mrf.mxu0  ;;  %v3320_v16 = vpop.permute.xlu1 %1622 }
 0x276   : > { %v1395_v49 = vadd.f32 %v1394_v63, %v1365_v56  ;;  %v1285_v33 = vadd.f32 %v1284_v46, %v3280_v29  ;;  %v1367_v53 = vmul.f32 %v3280_v29, %v3280_v29  ;;  %v3290_v9 = vadd.f32 %v2221_v8, %v1034_v36  ;;  %v1160_v56 = vpop.f32.mrf.mxu1  ;;  %4300 = vst [vmem:[#allocation24_spill] sm:$0xff] %v3320_v16 }
 0x277   : > { %v3293_v12 = vadd.f32 %v2222_v52, %v1147_v55  ;;  %v3296_v47 = vadd.f32 %v2223_v14, %v1038_v60  ;;  %v3299_v41 = vadd.f32 %v2224_v61, %v1151_v26  ;;  %v1040_v38 = vadd.f32 %v1039_v34, %v881_v25  ;;  %v885_v60 = vpop.permute.xlu0 %884  ;;  %v2225_v26 = vld [vmem:[%s2474_s9 + $0x188] sm:$0xff]  ;;  %v2226_v52 = vld [vmem:[%s2474_s9 + $0x198] sm:$0xff]  ;;  %v1049_v4 = vpop.f32.mrf.mxu0 }
 0x278   : > { %v1437_v63 = vadd.f32 %v1436_v23, %v1367_v53  ;;  %v1264_v46 = vadd.f32 %v1263_v1, %v3290_v9  ;;  %v1366_v8 = vmul.f32 %v3290_v9, %v3290_v9  ;;  %v1153_v3 = vadd.f32 %v1152_v57, %v881_v25 }
 0x279   : > { %v1306_v36 = vadd.f32 %v1305_v39, %v3293_v12  ;;  %v1368_v14 = vmul.f32 %v3293_v12, %v3293_v12  ;;  %v1244_v55 = vadd.f32 %v1243_v11, %v3296_v47  ;;  %v1369_v34 = vmul.f32 %v3296_v47, %v3296_v47 }
 0x27a   : > { %v1416_v53 = vadd.f32 %v1415_v51, %v1366_v8  ;;  %v1286_v1 = vadd.f32 %v1285_v33, %v3299_v41  ;;  %v1371_v23 = vmul.f32 %v3299_v41, %v3299_v41  ;;  %v3314_v57 = vadd.f32 %v2225_v26, %v1040_v38 }
 0x27b   : > { %v1458_v25 = vadd.f32 %v1457_v50, %v1368_v14  ;;  %v1396_v39 = vadd.f32 %v1395_v49, %v1369_v34  ;;  %v3317_v61 = vadd.f32 %v2226_v52, %v1153_v3  ;;  %v1042_v11 = vadd.f32 %v3250_v54, %v885_v60  ;;  %v1162_v50 = vpop.f32.mrf.mxu1  ;;  %v2227_v14 = vld [vmem:[%s2474_s9 + $0x1a0] sm:$0xff] }
 0x27c   : > { %v1438_v51 = vadd.f32 %v1437_v63, %v1371_v23  ;;  %v1265_v33 = vadd.f32 %v1264_v46, %v3314_v57  ;;  %v1370_v8 = vmul.f32 %v3314_v57, %v3314_v57  ;;  %v1155_v38 = vadd.f32 %v3258_v42, %v885_v60  ;;  %v2228_v46 = vld [vmem:[%s2474_s9 + $0x1b0] sm:$0xff] }
 0x27d   : > { %v1307_v49 = vadd.f32 %v1306_v36, %v3317_v61  ;;  %v1372_v3 = vmul.f32 %v3317_v61, %v3317_v61  ;;  %v3330_v54 = vadd.f32 %v2227_v14, %v1042_v11  ;;  %v1044_v34 = vadd.f32 %v1043_v30, %v885_v60  ;;  %v1051_v11 = vpop.f32.mrf.mxu0 }
 0x27e   : > { %v1417_v63 = vadd.f32 %v1416_v53, %v1370_v8  ;;  %v3333_v23 = vadd.f32 %v2228_v46, %v1155_v38  ;;  %v1157_v26 = vadd.f32 %v1156_v22, %v885_v60  ;;  %v1048_v52 = vadd.f32 %v1047_v13, %v3284_v5  ;;  %v2230_v8 = vld [vmem:[%s2474_s9 + $0x1b8] sm:$0xff]  ;;  %v2231_v22 = vld [vmem:[%s2474_s9 + $0x1c0] sm:$0xff] }
 0x27f   : > { %v1459_v42 = vadd.f32 %v1458_v25, %v1372_v3  ;;  %v1245_v16 = vadd.f32 %v1244_v55, %v3330_v54  ;;  %v1373_v36 = vmul.f32 %v3330_v54, %v3330_v54  ;;  %v3340_v17 = vadd.f32 %v2229_v21, %v1044_v34  ;;  %v1164_v55 = vpop.f32.mrf.mxu1 }
 0x280   : > { %v1287_v30 = vadd.f32 %v1286_v1, %v3333_v23  ;;  %v1375_v53 = vmul.f32 %v3333_v23, %v3333_v23  ;;  %v3346_v38 = vadd.f32 %v2230_v8, %v1157_v26  ;;  %v3349_v13 = vadd.f32 %v2231_v22, %v1048_v52  ;;  %v3355_v1 = vpop.permute.xlu1 %1630  ;;  %v893_v52 = vpop.permute.xlu0 %892 }
 0x281   : > { %v1397_v60 = vadd.f32 %v1396_v39, %v1373_v36  ;;  %v1266_v25 = vadd.f32 %v1265_v33, %v3340_v17  ;;  %v1374_v21 = vmul.f32 %v3340_v17, %v3340_v17  ;;  %v1161_v3 = vadd.f32 %v1160_v56, %v3284_v5  ;;  %4302 = vst [vmem:[#allocation17_spill] sm:$0xff] %v3355_v1  ;;  %v2232_v36 = vld [vmem:[%s2474_s9 + $0x1d0] sm:$0xff]  ;;  %v1166_v1 = vpop.f32.mrf.mxu1 }
 0x282   : > { %4301 = vst [vmem:[#allocation25_spill] sm:$0xff] %v3349_v13  ;;  %v1439_v14 = vadd.f32 %v1438_v51, %v1375_v53  ;;  %v1308_v34 = vadd.f32 %v1307_v49, %v3346_v38  ;;  %v1376_v46 = vmul.f32 %v3346_v38, %v3346_v38  ;;  %v1246_v26 = vadd.f32 %v1245_v16, %v3349_v13  ;;  %v1053_v49 = vpop.f32.mrf.mxu0 }
 0x283   : > { %v1418_v39 = vadd.f32 %v1417_v63, %v1374_v21  ;;  %v1377_v33 = vmul.f32 %v3349_v13, %v3349_v13  ;;  %v3364_v56 = vadd.f32 %v2232_v36, %v1161_v3  ;;  %v1050_v51 = vadd.f32 %v1049_v4, %v3284_v5  ;;  %v2233_v13 = vld [vmem:[%s2474_s9 + $0x1c8] sm:$0xff]  ;;  %v2234_v3 = vld [vmem:[%s2474_s9 + $0x1d8] sm:$0xff]  ;;  %v2235_v4 = vld [vmem:[%s2474_s9 + $0x1e0] sm:$0xff] }
 0x284   : > { %v1460_v53 = vadd.f32 %v1459_v42, %v1376_v46  ;;  %v1163_v8 = vadd.f32 %v1162_v50, %v3284_v5  ;;  %v1052_v22 = vadd.f32 %v1051_v11, %v893_v52  ;;  %v1165_v16 = vadd.f32 %v1164_v55, %v893_v52  ;;  %v2236_v42 = vld [vmem:[%s2474_s9 + $0x1f0] sm:$0xff] }
 0x285   : > { %4303 = vst [vmem:[#allocation16_spill] sm:$0xff] %v3364_v56  ;;  %v1398_v28 = vadd.f32 %v1397_v60, %v1377_v33  ;;  %v1288_v63 = vadd.f32 %v1287_v30, %v3364_v56  ;;  %v1379_v21 = vmul.f32 %v3364_v56, %v3364_v56  ;;  %v3372_v37 = vadd.f32 %v2233_v13, %v1050_v51  ;;  %v3386_v60 = vpop.permute.xlu0 %1626 }
 0x286   : > { %v3375_v36 = vadd.f32 %v2234_v3, %v1163_v8  ;;  %v3378_v62 = vadd.f32 %v2235_v4, %v1052_v22  ;;  %v3381_v5 = vadd.f32 %v2236_v42, %v1165_v16  ;;  %v1054_v50 = vadd.f32 %v1053_v49, %v893_v52  ;;  %4308 = vst [vmem:[#allocation45_spill] sm:$0xff] %v3386_v60  ;;  %v2238_v3 = vld [vmem:[%s2474_s9 + $0x1f8] sm:$0xff] }
 0x287   : > { %4304 = vst [vmem:[#allocation8_spill] sm:$0xff] %v3372_v37  ;;  %v1440_v11 = vadd.f32 %v1439_v14, %v1379_v21  ;;  %v1267_v30 = vadd.f32 %v1266_v25, %v3372_v37  ;;  %v1378_v55 = vmul.f32 %v3372_v37, %v3372_v37  ;;  %v1167_v13 = vadd.f32 %v1166_v1, %v893_v52  ;;  %v3394_v14 = vpop.permute.xlu1 %1634  ;;  %v2237_v52 = vld [vmem:[%s2474_s9 + $0x1e8] sm:$0xff]  ;;  %s3754_s9 = scalar_lea.vmem [#allocation5], %s2052_s7  ;;  %s2076_s7 = sshll.u32 %s2339_s18, 13 }
 0x288   : > { %4305 = vst [vmem:[#allocation10_spill] sm:$0xff] %v3375_v36  ;;  %4306 = vst [vmem:[#allocation9_spill] sm:$0xff] %v3378_v62  ;;  %v1309_v46 = vadd.f32 %v1308_v34, %v3375_v36  ;;  %v1380_v33 = vmul.f32 %v3375_v36, %v3375_v36  ;;  %v1247_v51 = vadd.f32 %v1246_v26, %v3378_v62  ;;  %s1957_s8 = sshll.u32 %s3754_s9, 4  ;;  %s4029_s10 = scalar_lea.hbm %s4091_s4, %s2076_s7  ;;  %s4031_s8 = int_to_ptr.vmem [resolvable:$true] %s1957_s8 }
 0x289   : > { %4307 = vst [vmem:[#allocation11_spill] sm:$0xff] %v3381_v5  ;;  %v1381_v49 = vmul.f32 %v3378_v62, %v3378_v62  ;;  %4309 = vst [vmem:[#allocation46_spill] sm:$0xff] %v3394_v14  ;;  %v1419_v25 = vadd.f32 %v1418_v39, %v1378_v55  ;;  %v1289_v8 = vadd.f32 %v1288_v63, %v3381_v5  ;;  %s2267_s12 = scalar_lea.vmem %s4031_s8, 8192  ;;  %p2274_p1 = scmp.lt.s32.totalorder %s4031_s8, %s2272_s14 }
 0x28a   : > { %v1383_v1 = vmul.f32 %v3381_v5, %v3381_v5  ;;  %v3400_v22 = vadd.f32 %v2237_v52, %v1054_v50  ;;  %v1461_v34 = vadd.f32 %v1460_v53, %v1380_v33  ;;  %v1248_v16 = vrot.slane %v1247_v51, 4  ;;  %p2268_p8 = scmp.ne.s32.totalorder %s4031_s8, %s2267_s12  ;;  %p2275_p3 = scmp.lt.s32.totalorder %s2273_s21, %s2267_s12 }
 0x28b   : > { %v1399_v21 = vadd.f32 %v1398_v28, %v1381_v49  ;;  %v3403_v4 = vadd.f32 %v2238_v3, %v1167_v13  ;;  %v1290_v26 = vrot.slane %v1289_v8, 4  ;;  %v3411_v13 = vpop.permute.xlu0 %1638  ;;  %v3413_v3 = vpop.permute.xlu1 %1642 }
 0x28c   : > { %4310 = vst [vmem:[#allocation47_spill] sm:$0xff] %v3400_v22  ;;  %v1441_v42 = vadd.f32 %v1440_v11, %v1383_v1  ;;  %v1268_v36 = vadd.f32 %v1267_v30, %v3400_v22  ;;  %v1382_v39 = vmul.f32 %v3400_v22, %v3400_v22  ;;  %v1249_v63 = vadd.f32 %v1248_v16, %v1247_v51  ;;  %p2269_p12 = pnand %p2268_p8, %p2435_p9  ;;  %p2276_p5 = por %p2275_p3, %p2274_p1 }
 0x28d   : > { %4311 = vst [vmem:[#allocation48_spill] sm:$0xff] %v3403_v4  ;;  %v1400_v55 = vrot.slane %v1399_v21, 4  ;;  %v1310_v56 = vadd.f32 %v1309_v46, %v3403_v4  ;;  %v1384_v50 = vmul.f32 %v3403_v4, %v3403_v4  ;;  %v1291_v53 = vadd.f32 %v1290_v26, %v1289_v8  ;;  %4312 = vst [vmem:[#allocation49_spill] sm:$0xff] %v3411_v13 }
 0x28e   : > { %v1442_v33 = vrot.slane %v1441_v42, 4  ;;  %v1269_v28 = vrot.slane %v1268_v36, 4  ;;  %v1420_v49 = vadd.f32 %v1419_v25, %v1382_v39  ;;  %v1250_v52 = vrot.slane %v1249_v63, 2  ;;  %4313 = vst [vmem:[#allocation50_spill] sm:$0xff] %v3413_v3  ;;  %p2270_p0 = pneg %p2269_p12 }
 0x28f   : > { %v1401_v11 = vadd.f32 %v1400_v55, %v1399_v21  ;;  %v1311_v1 = vrot.slane %v1310_v56, 4  ;;  %v1462_v30 = vadd.f32 %v1461_v34, %v1384_v50  ;;  %v1292_v37 = vrot.slane %v1291_v53, 2  ;;  %v3415_v31 = vpop.permute.xlu0 %1646 }
 0x290   : > { %v1443_v51 = vadd.f32 %v1442_v33, %v1441_v42  ;;  %v1270_v16 = vadd.f32 %v1269_v28, %v1268_v36  ;;  %v1421_v14 = vrot.slane %v1420_v49, 4  ;;  %v1251_v46 = vadd.f32 %v1250_v52, %v1249_v63  ;;  %4314 = vst [vmem:[#allocation51_spill] sm:$0xff] %v3415_v31  ;;  %p2277_p6 = pnand %p2276_p5, %p2270_p0 }
 0x291   : > { %v1402_v60 = vrot.slane %v1401_v11, 2  ;;  %v1312_v40 = vadd.f32 %v1311_v1, %v1310_v56  ;;  %v1463_v43 = vrot.slane %v1462_v30, 4  ;;  %v1293_v8 = vadd.f32 %v1292_v37, %v1291_v53  ;;  %v3417_v56 = vpop.permute.xlu1 %1650 }
 0x292   : > { %v1444_v26 = vrot.slane %v1443_v51, 2  ;;  %v1271_v45 = vrot.slane %v1270_v16, 2  ;;  %v1422_v25 = vadd.f32 %v1421_v14, %v1420_v49  ;;  %v1252_v39 = vrot.slane %v1251_v46, 1  ;;  %4315 = vst [vmem:[#allocation52_spill] sm:$0xff] %v3417_v56  ;;  %v4342_v56 = vld [vmem:[#allocation32_spill] sm:$0xff] }
 0x293   : > { %v1403_v13 = vadd.f32 %v1402_v60, %v1401_v11  ;;  %v1313_v18 = vrot.slane %v1312_v40, 2  ;;  %v1464_v21 = vadd.f32 %v1463_v43, %v1462_v30  ;;  %v1294_v55 = vrot.slane %v1293_v8, 1 }
 0x294   : > { %v1445_v34 = vadd.f32 %v1444_v26, %v1443_v51  ;;  %v1272_v50 = vadd.f32 %v1271_v45, %v1270_v16  ;;  %v1423_v3 = vrot.slane %v1422_v25, 2  ;;  %v1253_v36 = vadd.f32 %v1252_v39, %v1251_v46  ;;  %v4323_v46 = vld [vmem:[#allocation34_spill] sm:$0xff] }
 0x295   : > { %v1404_v42 = vrot.slane %v1403_v13, 1  ;;  %v1314_v63 = vadd.f32 %v1313_v18, %v1312_v40  ;;  %v1465_v33 = vrot.slane %v1464_v21, 2  ;;  %v1295_v37 = vadd.f32 %v1294_v55, %v1293_v8  ;;  %v4321_v40 = vld [vmem:[#allocation36_spill] sm:$0xff] }
 0x296   : > { %v1446_v53 = vrot.slane %v1445_v34, 1  ;;  %v1273_v28 = vrot.slane %v1272_v50, 1  ;;  %v1424_v14 = vadd.f32 %v1423_v3, %v1422_v25  ;;  %v3419_v49 = vmul.f32 0.0078125, %v1253_v36  ;;  %v3435_v25 = vpop.permute.xlu0 %1654 }
 0x297   : > { %v1405_v60 = vadd.f32 %v1404_v42, %v1403_v13  ;;  %v1315_v43 = vrot.slane %v1314_v63, 1  ;;  %v1466_v52 = vadd.f32 %v1465_v33, %v1464_v21  ;;  %v3421_v11 = vmul.f32 0.0078125, %v1295_v37 }
 0x298   : > { %v1447_v45 = vadd.f32 %v1446_v53, %v1445_v34  ;;  %v1274_v1 = vadd.f32 %v1273_v28, %v1272_v50  ;;  %v1425_v30 = vrot.slane %v1424_v14, 1  ;;  %v1473_v18 = vmul.f32 %v3419_v49, %v3419_v49  ;;  %v3443_v50 = vpop.permute.xlu1 %1658  ;;  %v4327_v28 = vld [vmem:[#allocation41_spill] sm:$0xff] }
 0x299   : > { %v1469_v51 = vmul.f32 0.0078125, %v1405_v60  ;;  %v1475_v13 = vmul.f32 %v3421_v11, %v3421_v11  ;;  %4316 = vst [vmem:[#allocation53_spill] sm:$0xff] %v3443_v50  ;;  %v1316_v42 = vadd.f32 %v1315_v43, %v1314_v63  ;;  %v1467_v33 = vrot.slane %v1466_v52, 1  ;;  %v4326_v63 = vld [vmem:[#allocation40_spill] sm:$0xff] }
 0x29a   : > { %v1471_v16 = vmul.f32 0.0078125, %v1447_v45  ;;  %v3441_v55 = vmul.f32 0.0078125, %v1274_v1  ;;  %v1426_v36 = vadd.f32 %v1425_v30, %v1424_v14  ;;  %v4339_v14 = vld [vmem:[#allocation31_spill] sm:$0xff]  ;;  %v4346_v22 = vsub.f32 %v3211_v35, %v3419_v49 }
 0x29b   : > { %v1477_v26 = vsub.f32 %v1469_v51, %v1473_v18  ;;  %v3451_v1 = vmul.f32 0.0078125, %v1316_v42  ;;  %v1468_v18 = vadd.f32 %v1467_v33, %v1466_v52  ;;  %v3465_v42 = vpop.permute.xlu0 %1662  ;;  %v4320_v52 = vld [vmem:[#allocation23_spill] sm:$0xff]  ;;  %v4348_v43 = vsub.f32 %v3267_v48, %v3419_v49 }
 0x29c   : > { %v1479_v34 = vsub.f32 %v1471_v16, %v1475_v13  ;;  %v1474_v53 = vmul.f32 %v3441_v55, %v3441_v55  ;;  %v1470_v51 = vmul.f32 0.0078125, %v1426_v36  ;;  %v4325_v33 = vld [vmem:[#allocation15_spill] sm:$0xff]  ;;  %v4350_v35 = vsub.f32 %v3219_v32, %v3421_v11 }
 0x29d   : > { %v1481_v37 = vmax.f32 %v1477_v26, 0.0  ;;  %v1472_v26 = vmul.f32 0.0078125, %v1468_v18  ;;  %v4318_v18 = vld [vmem:[#allocation44_spill] sm:$0xff]  ;;  %v4352_v48 = vsub.f32 %v3280_v29, %v3421_v11 }
 0x29e   : > { %v1483_v45 = vmax.f32 %v1479_v34, 0.0  ;;  %v1478_v13 = vsub.f32 %v1470_v51, %v1474_v53  ;;  %v1476_v34 = vmul.f32 %v3451_v1, %v3451_v1  ;;  %v3469_v53 = vpop.permute.xlu1 %1666  ;;  %v1527_v51 = vsub.f32 %v3248_v19, %v3421_v11  ;;  %v4328_v19 = vld [vmem:[#allocation12_spill] sm:$0xff] }
 0x29f   : > { %v1549_v16 = vadd.f32 1e-05, %v1481_v37  ;;  %v3497_v36 = vpop.permute.xlu0 %1670 }
 0x2a0   : > { %v1551_v30 = vadd.f32 1e-05, %v1483_v45  ;;  %v1482_v37 = vmax.f32 %v1478_v13, 0.0  ;;  %v1480_v45 = vsub.f32 %v1472_v26, %v1476_v34  ;;  %v4319_v34 = vld [vmem:[#allocation33_spill] sm:$0xff]  ;;  %v4324_v26 = vld [vmem:[#allocation43_spill] sm:$0xff] }
 0x2a1   : > { %2171 = vrsqrt.f32 %v1549_v16  ;;  %v4349_v16 = vsub.f32 %v3245_v59, %v3419_v49 }
 0x2a2   : > { %2173 = vrsqrt.f32 %v1551_v30  ;;  %v1550_v30 = vadd.f32 1e-05, %v1482_v37  ;;  %v1484_v13 = vmax.f32 %v1480_v45, 0.0  ;;  %v4317_v45 = vld [vmem:[#allocation35_spill] sm:$0xff] }
 0x2a3   : > { %v3547_v31 = vpop.permute.xlu0 %1678 }
 0x2a4   : > { %2175 = vrsqrt.f32 %v1550_v30  ;;  %v1552_v37 = vadd.f32 1e-05, %v1484_v13  ;;  %v3507_v13 = vpop.permute.xlu1 %1674  ;;  %v4322_v30 = vld [vmem:[#allocation42_spill] sm:$0xff]  ;;  %4336 = vst [vmem:[#allocation35_spill] sm:$0xff] %v3547_v31  ;;  %v4343_v31 = vld [vmem:[#allocation28_spill] sm:$0xff] }
 0x2a6   : > { %2177 = vrsqrt.f32 %v1552_v37  ;;  %v4329_v37 = vld [vmem:[#allocation22_spill] sm:$0xff] }
 0x2a8   : > { %v3559_v62 = vpop.permute.xlu1 %1682 }
 0x2a9   : > { %4341 = vst [vmem:[#allocation44_spill] sm:$0xff] %v3559_v62  ;;  %v4347_v62 = vsub.f32 %v3180_v58, %v3419_v49  ;;  %v4351_v58 = vsub.f32 %v3196_v2, %v3421_v11 }
 0x2ae   : > { %v3557_v8 = vpop.eup %2171 }
 0x2af   : > { %v3569_v5 = vpop.eup %2173  ;;  %v1593_v21 = vmul.f32 %v3557_v8, %v4346_v22  ;;  %v1589_v60 = vmul.f32 %v3557_v8, %v4347_v62  ;;  %v1601_v39 = vmul.f32 %v3557_v8, %v4348_v43  ;;  %v1597_v4 = vmul.f32 %v3557_v8, %v4349_v16 }
 0x2b0   : > { %v1595_v22 = vmul.f32 %v3569_v5, %v4350_v35  ;;  %v1591_v62 = vmul.f32 %v3569_v5, %v4351_v58  ;;  %v1603_v43 = vmul.f32 %v3569_v5, %v4352_v48  ;;  %v1599_v3 = vmul.f32 %v3569_v5, %v1527_v51 }
 0x2b1   : > { %v3601_v59 = vmul.f32 %v3443_v50, %v1593_v21  ;;  %v3604_v16 = vmul.f32 %v3435_v25, %v1589_v60  ;;  %v3607_v32 = vmul.f32 %v3469_v53, %v1601_v39  ;;  %v3610_v2 = vmul.f32 %v3465_v42, %v1597_v4  ;;  %v1755_v60 = vpop.permute.xlu1 %1754  ;;  %v3624_v58 = vpop.eup %2175 }
 0x2b2   : > { %v3613_v35 = vmul.f32 %v3443_v50, %v1595_v22  ;;  %v3616_v29 = vmul.f32 %v3435_v25, %v1591_v62  ;;  %v3619_v51 = vmul.f32 %v3469_v53, %v1603_v43  ;;  %v3622_v21 = vmul.f32 %v3465_v42, %v1599_v3  ;;  %v1751_v50 = vpop.permute.xlu0 %1750 }
 0x2b3   : > { %4353 = vst [vmem:[#allocation33_spill] sm:$0xff] %v3607_v32  ;;  %v4355_v39 = vsub.f32 %v3330_v54, %v3419_v49  ;;  %v4356_v22 = vsub.f32 %v3333_v23, %v3421_v11  ;;  %v4357_v48 = vsub.f32 %v3296_v47, %v3419_v49  ;;  %v4358_v3 = vsub.f32 %v3299_v41, %v3421_v11  ;;  %v3658_v32 = vpop.eup %2177 }
 0x2b4   : > { %4354 = vst [vmem:[#allocation23_spill] sm:$0xff] %v3619_v51  ;;  %v4359_v54 = vsub.f32 %v3290_v9, %v3441_v55  ;;  %v4360_v23 = vsub.f32 %v3256_v6, %v3441_v55  ;;  %v4361_v47 = vsub.f32 %v3340_v17, %v3441_v55  ;;  %v4362_v41 = vsub.f32 %v3314_v57, %v3441_v55 }
 0x2b5   : > { %v1609_v4 = vmul.f32 %v3557_v8, %v4355_v39  ;;  %v1611_v62 = vmul.f32 %v3569_v5, %v4356_v22  ;;  %v1605_v43 = vmul.f32 %v3557_v8, %v4357_v48  ;;  %v1607_v51 = vmul.f32 %v3569_v5, %v4358_v3 }
 0x2b6   : > { %v1602_v39 = vmul.f32 %v3624_v58, %v4359_v54  ;;  %v1598_v22 = vmul.f32 %v3624_v58, %v4360_v23  ;;  %v1610_v48 = vmul.f32 %v3624_v58, %v4361_v47  ;;  %v1606_v3 = vmul.f32 %v3624_v58, %v4362_v41 }
 0x2b7   : > { %v3661_v9 = vmul.f32 %v3507_v13, %v1609_v4  ;;  %v3664_v54 = vmul.f32 %v3507_v13, %v1611_v62  ;;  %v3667_v6 = vmul.f32 %v3497_v36, %v1605_v43  ;;  %v3670_v17 = vmul.f32 %v3497_v36, %v1607_v51 }
 0x2b8   : > { %v4364_v23 = vsub.f32 %v3293_v12, %v3451_v1  ;;  %v3677_v47 = vmul.f32 %v3469_v53, %v1602_v39  ;;  %v4365_v4 = vsub.f32 %v3264_v27, %v3451_v1  ;;  %v3684_v41 = vmul.f32 %v3465_v42, %v1598_v22 }
 0x2b9   : > { %4363 = vst [vmem:[#allocation36_spill] sm:$0xff] %v3664_v54  ;;  %v4366_v51 = vsub.f32 %v3346_v38, %v3451_v1  ;;  %v3691_v12 = vmul.f32 %v3507_v13, %v1610_v48  ;;  %v4368_v39 = vsub.f32 %v3317_v61, %v3451_v1  ;;  %v3698_v27 = vmul.f32 %v3497_v36, %v1606_v3  ;;  %v4379_v54 = vld [vmem:[#allocation24_spill] sm:$0xff] }
 0x2ba   : > { %v1604_v57 = vmul.f32 %v3658_v32, %v4364_v23  ;;  %v1600_v62 = vmul.f32 %v3658_v32, %v4365_v4  ;;  %v4369_v38 = vsub.f32 %v2999_v20, %v3419_v49  ;;  %v4373_v20 = vsub.f32 %v3020_v10, %v3451_v1 }
 0x2bb   : > { %v1612_v43 = vmul.f32 %v3658_v32, %v4366_v51  ;;  %4367 = vst [vmem:[#allocation42_spill] sm:$0xff] %v3691_v12  ;;  %v1608_v23 = vmul.f32 %v3658_v32, %v4368_v39  ;;  %v4370_v51 = vsub.f32 %v3013_v0, %v3441_v55  ;;  %v1759_v39 = vpop.permute.xlu1 %1758  ;;  %v1763_v0 = vpop.permute.xlu0 %1762 }
 0x2bc   : > { %v3701_v4 = vmul.f32 %v3469_v53, %v1604_v57  ;;  %v3704_v22 = vmul.f32 %v3465_v42, %v1600_v62  ;;  %v1561_v48 = vmul.f32 %v3557_v8, %v4369_v38  ;;  %v4372_v42 = vsub.f32 %v3006_v7, %v3421_v11  ;;  %v4374_v38 = vld [vmem:[#allocation45_spill] sm:$0xff] }
 0x2bd   : > { %v1562_v61 = vmul.f32 %v3624_v58, %v4370_v51  ;;  %v3715_v3 = vmul.f32 %v3507_v13, %v1612_v43  ;;  %v3718_v53 = vmul.f32 %v3497_v36, %v1608_v23  ;;  %v1564_v62 = vmul.f32 %v3658_v32, %v4373_v20 }
 0x2be   : > { %v1563_v57 = vmul.f32 %v3569_v5, %v4372_v42  ;;  %v1689_v51 = vmul.f32 %v4374_v38, %v1561_v48  ;;  %v4375_v36 = vsub.f32 %v2987_v24, %v3419_v49  ;;  %v4376_v7 = vsub.f32 %v2993_v44, %v3441_v55 }
 0x2bf   : > { %4371 = vst [vmem:[#allocation34_spill] sm:$0xff] %v3715_v3  ;;  %v1690_v13 = vmul.f32 %v4374_v38, %v1562_v61  ;;  %v1692_v42 = vmul.f32 %v4374_v38, %v1564_v62  ;;  %v4377_v48 = vsub.f32 %v2990_v15, %v3421_v11  ;;  %v4378_v61 = vsub.f32 %v4317_v45, %v3451_v1 }
 0x2c0   : > { %v1557_v43 = vmul.f32 %v3557_v8, %v4375_v36  ;;  %v1558_v23 = vmul.f32 %v3624_v58, %v4376_v7  ;;  %v1691_v10 = vmul.f32 %v4374_v38, %v1563_v57  ;;  %v1817_v36 = vadd.f32 %v1755_v60, %v1689_v51 }
 0x2c1   : > { %v1559_v20 = vmul.f32 %v3569_v5, %v4377_v48  ;;  %v1560_v24 = vmul.f32 %v3658_v32, %v4378_v61  ;;  %v1818_v3 = vadd.f32 %v1755_v60, %v1690_v13  ;;  %v1820_v57 = vadd.f32 %v1755_v60, %v1692_v42 }
 0x2c2   : > { %v1685_v44 = vmul.f32 %v4379_v54, %v1557_v43  ;;  %v1686_v7 = vmul.f32 %v4379_v54, %v1558_v23  ;;  %v1819_v12 = vadd.f32 %v1755_v60, %v1691_v10  ;;  %1881 = vst [vmem:[%s3754_s9 + $0x20] sm:$0xff] %v1817_v36  ;;  %v4380_v60 = vsub.f32 %v4318_v18, %v3419_v49  ;;  %v1767_v43 = vpop.permute.xlu1 %1766 }
 0x2c3   : > { %v1687_v62 = vmul.f32 %v4379_v54, %v1559_v20  ;;  %v1688_v38 = vmul.f32 %v4379_v54, %v1560_v24  ;;  %1882 = vst [vmem:[%s3754_s9 + $0x28] sm:$0xff] %v1818_v3  ;;  %v4381_v54 = vsub.f32 %v4319_v34, %v3441_v55  ;;  %1884 = vst [vmem:[%s3754_s9 + $0x38] sm:$0xff] %v1820_v57  ;;  %v3776_v34 = vpop.permute.xlu0 %1770  ;;  %v4384_v20 = vld [vmem:[#allocation17_spill] sm:$0xff] }
 0x2c4   : > { %v1813_v15 = vadd.f32 %v1751_v50, %v1685_v44  ;;  %v1814_v45 = vadd.f32 %v1751_v50, %v1686_v7  ;;  %v1565_v51 = vmul.f32 %v3557_v8, %v4380_v60  ;;  %1883 = vst [vmem:[%s3754_s9 + $0x30] sm:$0xff] %v1819_v12  ;;  %v4382_v3 = vsub.f32 %v4320_v52, %v3421_v11 }
 0x2c5   : > { %v1566_v13 = vmul.f32 %v3624_v58, %v4381_v54  ;;  %v1815_v23 = vadd.f32 %v1751_v50, %v1687_v62  ;;  %v1816_v10 = vadd.f32 %v1751_v50, %v1688_v38  ;;  %v4383_v18 = vsub.f32 %v4321_v40, %v3451_v1 }
 0x2c6   : > { %v1567_v42 = vmul.f32 %v3569_v5, %v4382_v3  ;;  %1877 = vst [vmem:[%s3754_s9] sm:$0xff] %v1813_v15  ;;  %1878 = vst [vmem:[%s3754_s9 + $0x8] sm:$0xff] %v1814_v45  ;;  %v1693_v61 = vmul.f32 %v4384_v20, %v1565_v51  ;;  %v4385_v50 = vsub.f32 %v4322_v30, %v3419_v49  ;;  %v4389_v15 = vld [vmem:[#allocation46_spill] sm:$0xff] }
 0x2c7   : > { %v1568_v48 = vmul.f32 %v3658_v32, %v4383_v18  ;;  %v1694_v12 = vmul.f32 %v4384_v20, %v1566_v13  ;;  %v4386_v24 = vsub.f32 %v4323_v46, %v3441_v55  ;;  %1879 = vst [vmem:[%s3754_s9 + $0x10] sm:$0xff] %v1815_v23  ;;  %1880 = vst [vmem:[%s3754_s9 + $0x18] sm:$0xff] %v1816_v10  ;;  %v1775_v18 = vpop.permute.xlu1 %1774 }
 0x2c8   : > { %v1569_v52 = vmul.f32 %v3557_v8, %v4385_v50  ;;  %v1695_v36 = vmul.f32 %v4384_v20, %v1567_v42  ;;  %v4387_v7 = vsub.f32 %v4324_v26, %v3421_v11  ;;  %v4388_v57 = vsub.f32 %v4325_v33, %v3451_v1 }
 0x2c9   : > { %v1570_v40 = vmul.f32 %v3624_v58, %v4386_v24  ;;  %v1696_v44 = vmul.f32 %v4384_v20, %v1568_v48  ;;  %v1821_v62 = vadd.f32 %v1759_v39, %v1693_v61  ;;  %v1822_v38 = vadd.f32 %v1759_v39, %v1694_v12 }
 0x2ca   : > { %v1571_v30 = vmul.f32 %v3569_v5, %v4387_v7  ;;  %v1572_v46 = vmul.f32 %v3658_v32, %v4388_v57  ;;  %v1697_v45 = vmul.f32 %v4389_v15, %v1569_v52  ;;  %v1823_v51 = vadd.f32 %v1759_v39, %v1695_v36  ;;  %v4394_v52 = vld [vmem:[#allocation49_spill] sm:$0xff]  ;;  %v4395_v36 = vld [vmem:[#allocation38_spill] sm:$0xff] }
 0x2cb   : > { %v1698_v60 = vmul.f32 %v4389_v15, %v1570_v40  ;;  %v1824_v54 = vadd.f32 %v1759_v39, %v1696_v44  ;;  %1885 = vst [vmem:[%s3754_s9 + $0x40] sm:$0xff] %v1821_v62  ;;  %1886 = vst [vmem:[%s3754_s9 + $0x48] sm:$0xff] %v1822_v38  ;;  %v4390_v10 = vsub.f32 %v4326_v63, %v3419_v49  ;;  %v4397_v44 = vld [vmem:[#allocation39_spill] sm:$0xff] }
 0x2cc   : > { %v1699_v13 = vmul.f32 %v4389_v15, %v1571_v30  ;;  %v1700_v26 = vmul.f32 %v4389_v15, %v1572_v46  ;;  %v1825_v33 = vadd.f32 %v1763_v0, %v1697_v45  ;;  %v4391_v42 = vsub.f32 %v4327_v28, %v3441_v55  ;;  %1887 = vst [vmem:[%s3754_s9 + $0x50] sm:$0xff] %v1823_v51  ;;  %v3826_v28 = vpop.permute.xlu0 %1778  ;;  %v4399_v46 = vld [vmem:[#allocation37_spill] sm:$0xff]  ;;  %v4401_v15 = vld [vmem:[#allocation20_spill] sm:$0xff] }
 0x2cd   : > { %v1826_v23 = vadd.f32 %v1763_v0, %v1698_v60  ;;  %v1573_v3 = vmul.f32 %v3557_v8, %v4390_v10  ;;  %1888 = vst [vmem:[%s3754_s9 + $0x58] sm:$0xff] %v1824_v54  ;;  %v4392_v61 = vsub.f32 %v4328_v19, %v3421_v11  ;;  %v4393_v63 = vsub.f32 %v4329_v37, %v3451_v1 }
 0x2ce   : > { %v1574_v39 = vmul.f32 %v3624_v58, %v4391_v42  ;;  %v1827_v48 = vadd.f32 %v1763_v0, %v1699_v13  ;;  %v1828_v20 = vadd.f32 %v1763_v0, %v1700_v26  ;;  %1889 = vst [vmem:[%s3754_s9 + $0x60] sm:$0xff] %v1825_v33  ;;  %v4396_v0 = vsub.f32 %v4395_v36, %v3419_v49  ;;  %v4403_v13 = vld [vmem:[#allocation50_spill] sm:$0xff] }
 0x2cf   : > { %v1575_v12 = vmul.f32 %v3569_v5, %v4392_v61  ;;  %v1576_v50 = vmul.f32 %v3658_v32, %v4393_v63  ;;  %1890 = vst [vmem:[%s3754_s9 + $0x68] sm:$0xff] %v1826_v23  ;;  %v1701_v24 = vmul.f32 %v4394_v52, %v1573_v3  ;;  %v4398_v7 = vsub.f32 %v4397_v44, %v3441_v55  ;;  %v4406_v63 = vld [vmem:[#allocation13_spill] sm:$0xff]  ;;  %v4408_v36 = vld [vmem:[#allocation14_spill] sm:$0xff]  ;;  %v4410_v44 = vld [vmem:[#allocation19_spill] sm:$0xff] }
 0x2d0   : > { %v1702_v40 = vmul.f32 %v4394_v52, %v1574_v39  ;;  %v1577_v19 = vmul.f32 %v3557_v8, %v4396_v0  ;;  %1891 = vst [vmem:[%s3754_s9 + $0x70] sm:$0xff] %v1827_v48  ;;  %1892 = vst [vmem:[%s3754_s9 + $0x78] sm:$0xff] %v1828_v20  ;;  %v4400_v62 = vsub.f32 %v4399_v46, %v3421_v11  ;;  %v4404_v20 = vld [vmem:[#allocation29_spill] sm:$0xff] }
 0x2d1   : > { %v1578_v37 = vmul.f32 %v3624_v58, %v4398_v7  ;;  %v1703_v30 = vmul.f32 %v4394_v52, %v1575_v12  ;;  %v1704_v57 = vmul.f32 %v4394_v52, %v1576_v50  ;;  %v4402_v45 = vsub.f32 %v4401_v15, %v3451_v1  ;;  %v1783_v52 = vpop.permute.xlu1 %1782  ;;  %v4414_v15 = vld [vmem:[#allocation21_spill] sm:$0xff] }
 0x2d2   : > { %v1579_v38 = vmul.f32 %v3569_v5, %v4400_v62  ;;  %v1829_v51 = vadd.f32 %v1767_v43, %v1701_v24  ;;  %v1830_v54 = vadd.f32 %v1767_v43, %v1702_v40  ;;  %v1705_v26 = vmul.f32 %v4403_v13, %v1577_v19 }
 0x2d3   : > { %v1580_v60 = vmul.f32 %v3658_v32, %v4402_v45  ;;  %v1706_v33 = vmul.f32 %v4403_v13, %v1578_v37  ;;  %v1831_v23 = vadd.f32 %v1767_v43, %v1703_v30  ;;  %v1832_v10 = vadd.f32 %v1767_v43, %v1704_v57  ;;  %v3880_v30 = vpop.permute.xlu0 %1786  ;;  %v4412_v57 = vld [vmem:[#allocation51_spill] sm:$0xff] }
 0x2d4   : > { %v1707_v3 = vmul.f32 %v4403_v13, %v1579_v38  ;;  %1893 = vst [vmem:[%s3754_s9 + $0x80] sm:$0xff] %v1829_v51  ;;  %1894 = vst [vmem:[%s3754_s9 + $0x88] sm:$0xff] %v1830_v54  ;;  %v1833_v39 = vadd.f32 %v3776_v34, %v1705_v26  ;;  %v4405_v61 = vsub.f32 %v4404_v20, %v3419_v49 }
 0x2d5   : > { %v1708_v42 = vmul.f32 %v4403_v13, %v1580_v60  ;;  %v1834_v48 = vadd.f32 %v3776_v34, %v1706_v33  ;;  %v4407_v43 = vsub.f32 %v4406_v63, %v3441_v55  ;;  %1895 = vst [vmem:[%s3754_s9 + $0x90] sm:$0xff] %v1831_v23  ;;  %1896 = vst [vmem:[%s3754_s9 + $0x98] sm:$0xff] %v1832_v10  ;;  %v4419_v63 = vld [vmem:[#allocation30_spill] sm:$0xff] }
 0x2d6   : > { %v1581_v12 = vmul.f32 %v3557_v8, %v4405_v61  ;;  %v1835_v24 = vadd.f32 %v3776_v34, %v1707_v3  ;;  %v4409_v0 = vsub.f32 %v4408_v36, %v3421_v11  ;;  %v4411_v7 = vsub.f32 %v4410_v44, %v3451_v1  ;;  %1897 = vst [vmem:[%s3754_s9 + $0xa0] sm:$0xff] %v1833_v39  ;;  %v4418_v3 = vld [vmem:[#allocation52_spill] sm:$0xff]  ;;  %v1791_v36 = vpop.permute.xlu1 %1790 }
 0x2d7   : > { %v1582_v50 = vmul.f32 %v3624_v58, %v4407_v43  ;;  %v1836_v40 = vadd.f32 %v3776_v34, %v1708_v42  ;;  %1898 = vst [vmem:[%s3754_s9 + $0xa8] sm:$0xff] %v1834_v48  ;;  %v4413_v34 = vsub.f32 %v4339_v14, %v3419_v49  ;;  %v4415_v45 = vsub.f32 %v4414_v15, %v3441_v55 }
 0x2d8   : > { %v1583_v19 = vmul.f32 %v3569_v5, %v4409_v0  ;;  %v1584_v37 = vmul.f32 %v3658_v32, %v4411_v7  ;;  %v1709_v46 = vmul.f32 %v4412_v57, %v1581_v12  ;;  %1899 = vst [vmem:[%s3754_s9 + $0xb0] sm:$0xff] %v1835_v24  ;;  %v4416_v13 = vsub.f32 %v4342_v56, %v3421_v11  ;;  %v4421_v24 = vld [vmem:[#allocation26_spill] sm:$0xff] }
 0x2d9   : > { %v1710_v62 = vmul.f32 %v4412_v57, %v1582_v50  ;;  %v1585_v38 = vmul.f32 %v3557_v8, %v4413_v34  ;;  %v1586_v60 = vmul.f32 %v3624_v58, %v4415_v45  ;;  %1900 = vst [vmem:[%s3754_s9 + $0xb8] sm:$0xff] %v1836_v40  ;;  %v4417_v26 = vsub.f32 %v4343_v31, %v3451_v1 }
 0x2da   : > { %v1711_v51 = vmul.f32 %v4412_v57, %v1583_v19  ;;  %v1712_v54 = vmul.f32 %v4412_v57, %v1584_v37  ;;  %v1587_v14 = vmul.f32 %v3569_v5, %v4416_v13  ;;  %v1837_v23 = vadd.f32 %v1775_v18, %v1709_v46  ;;  %v1795_v37 = vpop.permute.xlu0 %1794  ;;  %v4426_v13 = vld [vmem:[#allocation53_spill] sm:$0xff] }
 0x2db   : > { %v1588_v33 = vmul.f32 %v3658_v32, %v4417_v26  ;;  %v1838_v10 = vadd.f32 %v1775_v18, %v1710_v62  ;;  %v1713_v42 = vmul.f32 %v4418_v3, %v1585_v38  ;;  %v1714_v39 = vmul.f32 %v4418_v3, %v1586_v60  ;;  %v4423_v62 = vld [vmem:[#allocation27_spill] sm:$0xff]  ;;  %v4424_v38 = vld [vmem:[#allocation18_spill] sm:$0xff] }
 0x2dc   : > { %v1839_v48 = vadd.f32 %v1775_v18, %v1711_v51  ;;  %v1840_v20 = vadd.f32 %v1775_v18, %v1712_v54  ;;  %v1715_v61 = vmul.f32 %v4418_v3, %v1587_v14  ;;  %1901 = vst [vmem:[%s3754_s9 + $0xc0] sm:$0xff] %v1837_v23  ;;  %v4420_v43 = vsub.f32 %v4419_v63, %v3441_v55 }
 0x2dd   : > { %v1716_v56 = vmul.f32 %v4418_v3, %v1588_v33  ;;  %1902 = vst [vmem:[%s3754_s9 + $0xc8] sm:$0xff] %v1838_v10  ;;  %v1841_v31 = vadd.f32 %v3826_v28, %v1713_v42  ;;  %v1842_v12 = vadd.f32 %v3826_v28, %v1714_v39  ;;  %v4422_v18 = vsub.f32 %v4421_v24, %v3451_v1  ;;  %v4427_v33 = vld [vmem:[#allocation23_spill] sm:$0xff]  ;;  %v1799_v10 = vpop.permute.xlu1 %1798 }
 0x2de   : > { %v1590_v50 = vmul.f32 %v3624_v58, %v4420_v43  ;;  %1903 = vst [vmem:[%s3754_s9 + $0xd0] sm:$0xff] %v1839_v48  ;;  %1904 = vst [vmem:[%s3754_s9 + $0xd8] sm:$0xff] %v1840_v20  ;;  %v1843_v0 = vadd.f32 %v3826_v28, %v1715_v61  ;;  %v1845_v44 = vadd.f32 %v1783_v52, %v3604_v16  ;;  %v1803_v39 = vpop.permute.xlu0 %1802 }
 0x2df   : > { %v1592_v40 = vmul.f32 %v3658_v32, %v4422_v18  ;;  %v1844_v19 = vadd.f32 %v3826_v28, %v1716_v56  ;;  %v1847_v7 = vadd.f32 %v1783_v52, %v3616_v29  ;;  %1905 = vst [vmem:[%s3754_s9 + $0xe0] sm:$0xff] %v1841_v31  ;;  %1906 = vst [vmem:[%s3754_s9 + $0xe8] sm:$0xff] %v1842_v12  ;;  %v4431_v31 = vld [vmem:[#allocation25_spill] sm:$0xff]  ;;  %v4432_v12 = vld [vmem:[#allocation8_spill] sm:$0xff] }
 0x2e0   : > { %v1718_v57 = vmul.f32 %v3435_v25, %v1590_v50  ;;  %v1522_v34 = vsub.f32 %v4423_v62, %v3441_v55  ;;  %v1524_v15 = vsub.f32 %v4424_v38, %v3451_v1  ;;  %1907 = vst [vmem:[%s3754_s9 + $0xf0] sm:$0xff] %v1843_v0  ;;  %1909 = vst [vmem:[%s3754_s9 + $0x100] sm:$0xff] %v1845_v44  ;;  %v4434_v50 = vld [vmem:[#allocation10_spill] sm:$0xff]  ;;  %v4435_v18 = vld [vmem:[#allocation9_spill] sm:$0xff] }
 0x2e1   : > { %v1720_v46 = vmul.f32 %v3435_v25, %v1592_v40  ;;  %1908 = vst [vmem:[%s3754_s9 + $0xf8] sm:$0xff] %v1844_v19  ;;  %1911 = vst [vmem:[%s3754_s9 + $0x110] sm:$0xff] %v1847_v7  ;;  %v1849_v16 = vadd.f32 %v3880_v30, %v3601_v59  ;;  %v1851_v25 = vadd.f32 %v3880_v30, %v3613_v35  ;;  %v4437_v0 = vld [vmem:[#allocation47_spill] sm:$0xff] }
 0x2e2   : > { %v1853_v29 = vadd.f32 %v1791_v36, %v3610_v2  ;;  %v1854_v28 = vadd.f32 %v1791_v36, %v3684_v41  ;;  %v1846_v45 = vadd.f32 %v1783_v52, %v1718_v57  ;;  %v1594_v51 = vmul.f32 %v3624_v58, %v1522_v34  ;;  %v4425_v2 = vld [vmem:[#allocation33_spill] sm:$0xff]  ;;  %v4439_v57 = vld [vmem:[#allocation11_spill] sm:$0xff]  ;;  %v4441_v34 = vld [vmem:[#allocation48_spill] sm:$0xff] }
 0x2e3   : > { %v1848_v60 = vadd.f32 %v1783_v52, %v1720_v46  ;;  %v1596_v54 = vmul.f32 %v3658_v32, %v1524_v15  ;;  %1913 = vst [vmem:[%s3754_s9 + $0x120] sm:$0xff] %v1849_v16  ;;  %1915 = vst [vmem:[%s3754_s9 + $0x130] sm:$0xff] %v1851_v25  ;;  %v1855_v59 = vadd.f32 %v1791_v36, %v3622_v21  ;;  %v4443_v16 = vld [vmem:[#allocation44_spill] sm:$0xff] }
 0x2e4   : > { %v1856_v35 = vadd.f32 %v1791_v36, %v3704_v22  ;;  %1917 = vst [vmem:[%s3754_s9 + $0x140] sm:$0xff] %v1853_v29  ;;  %1918 = vst [vmem:[%s3754_s9 + $0x148] sm:$0xff] %v1854_v28  ;;  %v1857_v41 = vadd.f32 %v1795_v37, %v4425_v2  ;;  %v1858_v52 = vadd.f32 %v1795_v37, %v3677_v47  ;;  %v1811_v28 = vpop.permute.xlu0 %1810 }
 0x2e5   : > { %1910 = vst [vmem:[%s3754_s9 + $0x108] sm:$0xff] %v1846_v45  ;;  %1912 = vst [vmem:[%s3754_s9 + $0x118] sm:$0xff] %v1848_v60  ;;  %v1722_v14 = vmul.f32 %v4426_v13, %v1594_v51  ;;  %v1724_v26 = vmul.f32 %v4426_v13, %v1596_v54  ;;  %v1859_v23 = vadd.f32 %v1795_v37, %v4427_v33 }
 0x2e6   : > { %v1860_v21 = vadd.f32 %v1795_v37, %v3701_v4  ;;  %1919 = vst [vmem:[%s3754_s9 + $0x150] sm:$0xff] %v1855_v59  ;;  %1920 = vst [vmem:[%s3754_s9 + $0x158] sm:$0xff] %v1856_v35  ;;  %v1861_v47 = vadd.f32 %v1799_v10, %v3667_v6  ;;  %v1862_v22 = vadd.f32 %v1799_v10, %v3698_v27  ;;  %v4428_v6 = vld [vmem:[#allocation42_spill] sm:$0xff] }
 0x2e7   : > { %1921 = vst [vmem:[%s3754_s9 + $0x160] sm:$0xff] %v1857_v41  ;;  %1922 = vst [vmem:[%s3754_s9 + $0x168] sm:$0xff] %v1858_v52  ;;  %v1863_v3 = vadd.f32 %v1799_v10, %v3670_v17  ;;  %v1864_v42 = vadd.f32 %v1799_v10, %v3718_v53  ;;  %v1850_v4 = vadd.f32 %v3880_v30, %v1722_v14  ;;  %v4429_v17 = vld [vmem:[#allocation36_spill] sm:$0xff]  ;;  %v4430_v53 = vld [vmem:[#allocation34_spill] sm:$0xff] }
 0x2e8   : > { %v1852_v48 = vadd.f32 %v3880_v30, %v1724_v26  ;;  %1923 = vst [vmem:[%s3754_s9 + $0x170] sm:$0xff] %v1859_v23  ;;  %1924 = vst [vmem:[%s3754_s9 + $0x178] sm:$0xff] %v1860_v21  ;;  %v1865_v20 = vadd.f32 %v1803_v39, %v3661_v9  ;;  %v1866_v61 = vadd.f32 %v1803_v39, %v4428_v6  ;;  %v4433_v9 = vld [vmem:[#allocation16_spill] sm:$0xff] }
 0x2e9   : > { %1925 = vst [vmem:[%s3754_s9 + $0x180] sm:$0xff] %v1861_v47  ;;  %1926 = vst [vmem:[%s3754_s9 + $0x188] sm:$0xff] %v1862_v22  ;;  %v1867_v27 = vadd.f32 %v1803_v39, %v4429_v17  ;;  %v1868_v56 = vadd.f32 %v1803_v39, %v4430_v53  ;;  %v1541_v30 = vsub.f32 %v4431_v31, %v3419_v49 }
 0x2ea   : > { %1927 = vst [vmem:[%s3754_s9 + $0x190] sm:$0xff] %v1863_v3  ;;  %1928 = vst [vmem:[%s3754_s9 + $0x198] sm:$0xff] %v1864_v42  ;;  %v1542_v63 = vsub.f32 %v4432_v12, %v3441_v55  ;;  %v1543_v43 = vsub.f32 %v4433_v9, %v3421_v11  ;;  %v1544_v24 = vsub.f32 %v4434_v50, %v3451_v1 }
 0x2eb   : > { %1914 = vst [vmem:[%s3754_s9 + $0x128] sm:$0xff] %v1850_v4  ;;  %1916 = vst [vmem:[%s3754_s9 + $0x138] sm:$0xff] %v1852_v48  ;;  %v4436_v40 = vsub.f32 %v4435_v18, %v3419_v49  ;;  %v4438_v19 = vsub.f32 %v4437_v0, %v3441_v55  ;;  %v1613_v7 = vmul.f32 %v3557_v8, %v1541_v30 }
 0x2ec   : > { %1929 = vst [vmem:[%s3754_s9 + $0x1a0] sm:$0xff] %v1865_v20  ;;  %1930 = vst [vmem:[%s3754_s9 + $0x1a8] sm:$0xff] %v1866_v61  ;;  %v1614_v37 = vmul.f32 %v3624_v58, %v1542_v63  ;;  %v4440_v46 = vsub.f32 %v4439_v57, %v3421_v11  ;;  %v4442_v49 = vsub.f32 %v4441_v34, %v3451_v1 }
 0x2ed   : > { %v1617_v36 = vmul.f32 %v3557_v8, %v4436_v40  ;;  %v1618_v44 = vmul.f32 %v3624_v58, %v4438_v19  ;;  %1931 = vst [vmem:[%s3754_s9 + $0x1b0] sm:$0xff] %v1867_v27  ;;  %1932 = vst [vmem:[%s3754_s9 + $0x1b8] sm:$0xff] %v1868_v56  ;;  %v1615_v55 = vmul.f32 %v3569_v5, %v1543_v43  ;;  %v4444_v58 = vld [vmem:[#allocation35_spill] sm:$0xff] }
 0x2ee   : > { %v1619_v62 = vmul.f32 %v3569_v5, %v4440_v46  ;;  %v1620_v38 = vmul.f32 %v3658_v32, %v4442_v49  ;;  %v1616_v15 = vmul.f32 %v3658_v32, %v1544_v24  ;;  %v1741_v29 = vmul.f32 %v4444_v58, %v1613_v7  ;;  %v1807_v5 = vpop.permute.xlu1 %1806 }
 0x2ef   : > { %v1745_v25 = vmul.f32 %v4443_v16, %v1617_v36  ;;  %v1746_v8 = vmul.f32 %v4443_v16, %v1618_v44  ;;  %v1742_v11 = vmul.f32 %v4444_v58, %v1614_v37  ;;  %v1743_v32 = vmul.f32 %v4444_v58, %v1615_v55 }
 0x2f0   : > { %v1747_v1 = vmul.f32 %v4443_v16, %v1619_v62  ;;  %v1748_v45 = vmul.f32 %v4443_v16, %v1620_v38  ;;  %v1744_v60 = vmul.f32 %v4444_v58, %v1616_v15  ;;  %v1869_v59 = vadd.f32 %v1807_v5, %v1741_v29 }
 0x2f1   : > { %v1873_v51 = vadd.f32 %v1811_v28, %v1745_v25  ;;  %v1874_v54 = vadd.f32 %v1811_v28, %v1746_v8  ;;  %v1870_v35 = vadd.f32 %v1807_v5, %v1742_v11  ;;  %v1871_v52 = vadd.f32 %v1807_v5, %v1743_v32 }
 0x2f2   : > { %v1875_v2 = vadd.f32 %v1811_v28, %v1747_v1  ;;  %v1876_v41 = vadd.f32 %v1811_v28, %v1748_v45  ;;  %v1872_v13 = vadd.f32 %v1807_v5, %v1744_v60  ;;  %1933 = vst [vmem:[%s3754_s9 + $0x1c0] sm:$0xff] %v1869_v59 }
 0x2f3   : > { %1937 = vst [vmem:[%s3754_s9 + $0x1e0] sm:$0xff] %v1873_v51  ;;  %1938 = vst [vmem:[%s3754_s9 + $0x1e8] sm:$0xff] %v1874_v54 }
 0x2f4   : > { %1934 = vst [vmem:[%s3754_s9 + $0x1c8] sm:$0xff] %v1870_v35  ;;  %1939 = vst [vmem:[%s3754_s9 + $0x1f0] sm:$0xff] %v1875_v2 }
 0x2f5   : > { %1940 = vst [vmem:[%s3754_s9 + $0x1f8] sm:$0xff] %v1876_v41  ;;  %1935 = vst [vmem:[%s3754_s9 + $0x1d0] sm:$0xff] %v1871_v52 }
 0x2f6   : > { %1936 = vst [vmem:[%s3754_s9 + $0x1d8] sm:$0xff] %v1872_v13 }
 0x2f7   : > { %2280 = shalt.err (!%p2277_p6)
}
 0x2f8   : > { %s2281_s22 = scalar_lea.hbm %s4029_s10, 8192  ;;  %s2285_s25 = scalar_lea.hbm %s4091_s4, 16384 }
 0x2f9   : > { %p2282_p7 = scmp.ne.s32.totalorder %s4029_s10, %s2281_s22  ;;  %p2286_p13 = scmp.lt.s32.totalorder %s4029_s10, %s4091_s4 }
 0x2fa   : > { %p2287_p2 = scmp.lt.s32.totalorder %s2285_s25, %s2281_s22 }
 0x2fb   : > { %p2283_p10 = pnand %p2282_p7, %p2435_p9 }
 0x2fc   : > { %p2288_p8 = por %p2287_p2, %p2286_p13 }
 0x2fd   : > { %p2284_p4 = pneg %p2283_p10 }
 0x2ff   : > { %p2289_p12 = pnand %p2288_p8, %p2284_p4 }
 0x301   : > { %2292 = shalt.err (!%p2289_p12)
}
 0x302   : > { %s2357_s7 = smov 512   ;;  %s2358_s18 = smov 32  }
 0x303   : > { %2079 = dma.vmem_to_hbm [thread:$0]  (%p2435_p9), %s4031_s8, 8192, %s4029_s10, %s1942_s11, %s2357_s7, %s2357_s7, %s2358_s18  }
 0x304 PF: > { %s1972_s27 = sand.u32 1, %s2327_s15   ;;  %p4445_p0 = scmp.ge.s32.totalorder %s2347_s20, 2 }
 0x305   : > { %s1973_s12 = scalar_lea.sflag [#allocation4], %s1972_s27 }
 0x306   : > { %p2086_p1 = pnand %p4445_p0, %p2442_p11 }
 0x308   : > { %p2087_p3 = pneg %p2086_p1 }
 0x30a   : > { %2322 = dma.done.wait (%p2087_p3), %s1973_s12, 8192  }
 0x30b   : > { %2324 = vsyncadd (%p2087_p3), %s1973_s12, 4294959104  ;;  %s20_s20 = sadd.s32 1, %s2347_s20   ;;  %s4446_s15 = smov %s2331_s16 }
 0x30c   : > { %p17_p5 = scmp.ge.s32.totalorder %s20_s20, 4   ;;  %s4447_s16 = smov %s2335_s17 }
 0x30d   : > { %s4448_s17 = smov %s2440_s29  ;;  %s4449_s18 = smov %s2343_s19 }
 0x30e   : > { %s4450_s19 = smov %s4452_s23  ;;  %19 = sbr.rel (!%p17_p5) target bundleno = 6 (0x6), region = 81 }
 0x313   :  { %1978 = vsyncpa [#allocation3], 1 }
 0x314   :  { %1980 = vsyncpa [#allocation3 + $0x1], 1 }
 0x315   :  { %1981 = vsyncpa [#allocation4], 1 }
 0x316   :  { %1983 = vsyncpa [#allocation4 + $0x1], 1 }

</bundles_post_ra>
